<compile_context>
chip_gen: v7x
topology: tpu7x:2x2x1
jax: 0.10.0
libtpu: 0.0.40
codegen_flags: <defaults>
</compile_context>

<pallas_src>
import functools

import jax
import jax.numpy as jnp
from jax.experimental import pallas as pl
from jax.experimental.pallas import tpu as pltpu


# ----------------------------------------------------------------------------
# Fused Pallas kernel: GEMM + bias + (InstanceNorm+ReLU | tanh), one sample.
# ----------------------------------------------------------------------------
def _fused_conv_kernel(a_ref, w_ref, b_ref, o_ref, *, phases, epilogue):
    """One conv layer for one sample, fully fused.

    a_ref: (1, K, M)  im2col columns (M = spatial positions, lane-dense)
    w_ref: (R, K)     R = phases * C_out (phases > 1: sub-pixel conv-transpose)
    b_ref: (1, R, 1)  per-sample bias
    o_ref: (1, R, M)
    """
    # bf16 operands, f32 accumulation: full-rate MXU on v6e/v7x, fine on v5e.
    a = a_ref[0].astype(jnp.bfloat16)
    w = w_ref[...].astype(jnp.bfloat16)
    acc = jnp.dot(w, a, preferred_element_type=jnp.float32) + b_ref[0]

    if epilogue == "tanh":
        o_ref[0] = jnp.tanh(acc)          # EUP slot; ~free next to the matmul
        return

    # InstanceNorm2d(affine=False, eps=1e-5) + ReLU, fused.
    # Per-output-channel statistics over all spatial positions of this sample.
    # For the sub-pixel conv-transpose the R rows are `phases` row-blocks of
    # the same C_out channels, so the reduction also spans the row-blocks
    # (static slices keep everything 2-D and lane-dense).
    R, M = acc.shape
    cout = R // phases
    inv_n = 1.0 / float(phases * M)
    parts = ([acc] if phases == 1
             else [acc[p * cout:(p + 1) * cout, :] for p in range(phases)])
    tot = parts[0]
    for part in parts[1:]:
        tot = tot + part
    mean = jnp.sum(tot, axis=1, keepdims=True) * inv_n             # (cout, 1)
    centered = [part - mean for part in parts]
    ss = jnp.sum(centered[0] * centered[0], axis=1, keepdims=True)
    for part in centered[1:]:
        ss = ss + jnp.sum(part * part, axis=1, keepdims=True)
    scale = jax.lax.rsqrt(ss * inv_n + 1e-5)                       # (cout, 1)
    outs = [jnp.maximum(part * scale, 0.0) for part in centered]
    o_ref[0] = outs[0] if phases == 1 else jnp.concatenate(outs, axis=0)


def fused_conv_layer(a, w_mat, bias, *, phases=1, epilogue="in_relu"):
    """out[n] = epilogue(w_mat @ a[n] + bias[n]) for every sample n.

    a:     (N, K, M) float32 im2col matrix (spatial positions on the lane dim)
    w_mat: (R, K)    float32, R = phases * C_out
    bias:  (N, R, 1) float32
    ->     (N, R, M) float32
    """
    N, K, M = a.shape
    R = w_mat.shape[0]
    kernel = functools.partial(_fused_conv_kernel, phases=phases,
                               epilogue=epilogue)
    return pl.pallas_call(
        kernel,
        out_shape=jax.ShapeDtypeStruct((N, R, M), jnp.float32),
        grid=(N,),
        in_specs=[
            pl.BlockSpec((1, K, M), lambda i: (i, 0, 0)),
            pl.BlockSpec((R, K), lambda i: (0, 0)),
            pl.BlockSpec((1, R, 1), lambda i: (i, 0, 0)),
        ],
        out_specs=pl.BlockSpec((1, R, M), lambda i: (i, 0, 0)),
        compiler_params=pltpu.CompilerParams(
            dimension_semantics=("parallel",)),
    )(a, w_mat, bias)


# ----------------------------------------------------------------------------
# im2col glue (channels-first, K ordered tap-major / channel-minor)
# ----------------------------------------------------------------------------
def _im2col(xp, k, stride):
    """xp: (N, C, Hp, Wp) already padded -> (N, k*k*C, Ho*Wo)."""
    N, C, Hp, Wp = xp.shape
    Ho = (Hp - k) // stride + 1
    Wo = (Wp - k) // stride + 1
    taps = []
    for dy in range(k):
        for dx in range(k):
            taps.append(xp[:, :, dy:dy + stride * (Ho - 1) + 1:stride,
                               dx:dx + stride * (Wo - 1) + 1:stride])
    a = jnp.stack(taps, axis=1)                  # (N, k*k, C, Ho, Wo)
    return a.reshape(N, k * k * C, Ho * Wo)


def _im2col_2x2(x):
    """2x2 forward neighbourhood (one trailing zero pad) for the sub-pixel
    conv-transpose: x (N, C, H, W) -> (N, 4*C, H*W)."""
    N, C, H, W = x.shape
    xp = jnp.pad(x, ((0, 0), (0, 0), (0, 1), (0, 1)))
    taps = [xp[:, :, dy:dy + H, dx:dx + W] for dy in range(2) for dx in range(2)]
    a = jnp.stack(taps, axis=1)                  # (N, 4, C, H, W)
    return a.reshape(N, 4 * C, H * W)


def _convT_subpixel_weight(w_iohw):
    """ConvTranspose2d(k=3, stride=2, padding=1, output_padding=1) lowered to a
    single GEMM over the 2x2 input neighbourhood.  Row block p = ry*2+rx holds
    the C_out channels of output phase (2y+ry, 2x+rx); column block t = dy*2+dx
    holds the weights applied to input sample (y+dy, x+dx)."""
    C_in, C_out, k, _ = w_iohw.shape
    assert k == 3
    # equivalent ordinary-conv kernel (flipped, channel-swapped)
    w_eff = jnp.flip(jnp.transpose(w_iohw, (1, 0, 2, 3)), axis=(2, 3))

    def taps_for(r):   # output parity -> {input offset: w_eff kernel index}
        return {0: 1} if r == 0 else {0: 0, 1: 2}

    zero = jnp.zeros((C_out, C_in), w_iohw.dtype)
    rows = []
    for ry in range(2):
        for rx in range(2):
            ymap, xmap = taps_for(ry), taps_for(rx)
            cols = []
            for dy_off in range(2):
                for dx_off in range(2):
                    if dy_off in ymap and dx_off in xmap:
                        cols.append(w_eff[:, :, ymap[dy_off], xmap[dx_off]])
                    else:
                        cols.append(zero)
            rows.append(jnp.concatenate(cols, axis=1))   # (C_out, 4*C_in)
    return jnp.concatenate(rows, axis=0)                 # (4*C_out, 4*C_in)


# ----------------------------------------------------------------------------
# Parameters (deterministic synthetic init) + hoisted GEMM-ready layouts
# ----------------------------------------------------------------------------
def _init_conv(key, c_out, c_in, k):
    wk, bk = jax.random.split(key)
    bound = 1.0 / jnp.sqrt(float(c_in * k * k))
    w = jax.random.uniform(wk, (c_out, c_in, k, k), jnp.float32, -bound, bound)
    b = jax.random.uniform(bk, (c_out,), jnp.float32, -bound, bound)
    return w, b


def _init_conv_transpose(key, c_in, c_out, k):
    wk, bk = jax.random.split(key)
    bound = 1.0 / jnp.sqrt(float(c_out * k * k))
    w = jax.random.uniform(wk, (c_in, c_out, k, k), jnp.float32, -bound, bound)
    b = jax.random.uniform(bk, (c_out,), jnp.float32, -bound, bound)
    return w, b


def init_params(key, in_channels, out_channels, extra_channels, ngf):
    k0, k1, k2, k3 = jax.random.split(key, 4)
    p = {}
    p["w0"], p["b0"] = _init_conv(k0, ngf, in_channels + extra_channels, 7)
    p["w1"], p["b1"] = _init_conv(k1, ngf * 4, ngf + extra_channels, 3)
    p["w2"], p["b2"] = _init_conv_transpose(k2, ngf * 4 + extra_channels, ngf, 3)
    p["w3"], p["b3"] = _init_conv(k3, out_channels, ngf, 7)
    return p


def prepare_params(params, in_channels):
    """Hoisted (called once, outside the forward) GEMM-ready weight layouts."""
    def conv_mat(w):   # (C_out, C_in, k, k) -> (C_out, k*k*C_in), K=(dy,dx,c)
        return jnp.transpose(w, (0, 2, 3, 1)).reshape(w.shape[0], -1)

    w0 = params["w0"]
    return {
        "w0_mat": conv_mat(w0[:, :in_channels]),
        # tap-summed style weights: exact per-sample bias fold for layer 0
        "w0_style_sum": jnp.sum(w0[:, in_channels:], axis=(2, 3)),
        "b0": params["b0"],
        "w1_mat": conv_mat(params["w1"]),
        "b1": params["b1"],
        "w2_mat": _convT_subpixel_weight(params["w2"]),
        "b2": params["b2"],
        "w3_mat": conv_mat(params["w3"]),
        "b3": params["b3"],
    }


# ----------------------------------------------------------------------------
# Forward pass (mirrors StretchNet.forward with n_blocks=0)
# ----------------------------------------------------------------------------
def stretch_net_forward(data_nchw, style, prepped):
    x = data_nchw.astype(jnp.float32)                    # stays channels-first
    N, _, H, W = x.shape
    H2, W2 = H // 2, W // 2
    ngf = prepped["b0"].shape[0]
    out_ch = prepped["b3"].shape[0]

    style_vec = None
    if style is not None:
        style_vec = style.reshape(N, -1).astype(jnp.float32)      # (N, extra)

    # ---- model_0 (tag 1): ReflectionPad(3) + Conv7 + IN + ReLU --------------
    # Style channels are spatially constant; after reflection padding every 7x7
    # window sees the same constants, so their contribution folds exactly into
    # a per-sample bias (no concat, no style im2col).
    b0 = jnp.broadcast_to(prepped["b0"][None, :], (N, ngf))
    if style_vec is not None:
        b0 = b0 + style_vec @ prepped["w0_style_sum"].T
    xp = jnp.pad(x, ((0, 0), (0, 0), (3, 3), (3, 3)), mode="reflect")
    a0 = _im2col(xp, 7, 1)                                         # (N,147,256)
    y = fused_conv_layer(a0, prepped["w0_mat"], b0[:, :, None])
    y = y.reshape(N, ngf, H, W)

    # ---- model_1 (tag 1): Conv3 s2 p1 + IN + ReLU ---------------------------
    if style_vec is not None:
        s_full = jnp.broadcast_to(style_vec[:, :, None, None],
                                  (N, style_vec.shape[1], H, W))
        y = jnp.concatenate([y, s_full], axis=1)
    xp = jnp.pad(y, ((0, 0), (0, 0), (1, 1), (1, 1)))
    a1 = _im2col(xp, 3, 2)                                         # (N,108,64)
    b1 = jnp.broadcast_to(prepped["b1"][None, :, None], (N, 4 * ngf, 1))
    y = fused_conv_layer(a1, prepped["w1_mat"], b1)
    y = y.reshape(N, 4 * ngf, H2, W2)

    # ---- (tag 0) StretchBlocks: n_blocks = 0 --------------------------------
    # TODO(synk): StretchBlock is not defined in the provided source.

    # ---- model_2 (tag 1): ConvTranspose3 s2 p1 op1 + IN + ReLU --------------
    if style_vec is not None:
        s_half = jnp.broadcast_to(style_vec[:, :, None, None],
                                  (N, style_vec.shape[1], H2, W2))
        y = jnp.concatenate([y, s_half], axis=1)
    a2 = _im2col_2x2(y)                                            # (N,144,64)
    b2 = jnp.broadcast_to(jnp.tile(prepped["b2"], 4)[None, :, None],
                          (N, 4 * ngf, 1))
    y = fused_conv_layer(a2, prepped["w2_mat"], b2, phases=4)      # (N,32,64)
    # interleave the 4 sub-pixel phases -> (N, ngf, 2*H2, 2*W2)
    y = y.reshape(N, 2, 2, ngf, H2, W2)
    y = jnp.transpose(y, (0, 3, 4, 1, 5, 2)).reshape(N, ngf, H, W)

    # ---- model_3 (tag 2): ReflectionPad(3) + Conv7 + Tanh -------------------
    xp = jnp.pad(y, ((0, 0), (0, 0), (3, 3), (3, 3)), mode="reflect")
    a3 = _im2col(xp, 7, 1)                                         # (N,392,256)
    b3 = jnp.broadcast_to(prepped["b3"][None, :, None], (N, out_ch, 1))
    y = fused_conv_layer(a3, prepped["w3_mat"], b3, epilogue="tanh")
    return y.reshape(N, out_ch, H, W)                              # NCHW


# ----------------------------------------------------------------------------
# Pure-XLA f32 reference (for a numerical sanity check)
# ----------------------------------------------------------------------------
def _reference_forward(data, style, params):
    prec = jax.lax.Precision.HIGHEST
    x = data.astype(jnp.float32)
    N = x.shape[0]
    s = style.reshape(N, -1, 1, 1).astype(jnp.float32)

    def cat(x):
        return jnp.concatenate(
            [x, jnp.broadcast_to(s, (N, s.shape[1], x.shape[2], x.shape[3]))],
            axis=1)

    def conv(x, w, b, stride=1, pad=0):
        y = jax.lax.conv_general_dilated(
            x, w, (stride, stride), [(pad, pad), (pad, pad)],
            dimension_numbers=("NCHW", "OIHW", "NCHW"), precision=prec)
        return y + b[None, :, None, None]

    def convT(x, w, b):  # k=3, s=2, p=1, op=1
        w_eff = jnp.flip(jnp.transpose(w, (1, 0, 2, 3)), axis=(2, 3))
        y = jax.lax.conv_general_dilated(
            x, w_eff, (1, 1), [(1, 2), (1, 2)], lhs_dilation=(2, 2),
            dimension_numbers=("NCHW", "OIHW", "NCHW"), precision=prec)
        return y + b[None, :, None, None]

    def inorm_relu(x):
        m = jnp.mean(x, axis=(2, 3), keepdims=True)
        v = jnp.mean((x - m) ** 2, axis=(2, 3), keepdims=True)
        return jnp.maximum((x - m) * jax.lax.rsqrt(v + 1e-5), 0.0)

    x = cat(x)
    x = jnp.pad(x, ((0, 0), (0, 0), (3, 3), (3, 3)), mode="reflect")
    x = inorm_relu(conv(x, params["w0"], params["b0"]))
    x = cat(x)
    x = inorm_relu(conv(x, params["w1"], params["b1"], stride=2, pad=1))
    x = cat(x)
    x = inorm_relu(convT(x, params["w2"], params["b2"]))
    x = jnp.pad(x, ((0, 0), (0, 0), (3, 3), (3, 3)), mode="reflect")
    return jnp.tanh(conv(x, params["w3"], params["b3"]))


# ----------------------------------------------------------------------------
if __name__ == "__main__":
    IN_CH, OUT_CH, EXTRA_CH, NGF = 3, 3, 4, 8
    BATCH, H, W = 2, 16, 16

    key = jax.random.PRNGKey(0)
    k_data, k_style, k_params = jax.random.split(key, 3)

    data = jax.random.normal(k_data, (BATCH, IN_CH, H, W), jnp.float32)
    style = jax.random.normal(k_style, (BATCH, 1, EXTRA_CH), jnp.float32)
    params = init_params(k_params, IN_CH, OUT_CH, EXTRA_CH, NGF)
    prepped = prepare_params(params, IN_CH)          # hoisted weight layouts

    fwd = jax.jit(stretch_net_forward)
    out = jax.block_until_ready(fwd(data, style, prepped))

    assert out.shape == (BATCH, OUT_CH, H, W), out.shape
    assert bool(jnp.all(jnp.isfinite(out)))
    assert bool(jnp.all(jnp.abs(out) <= 1.0))        # tanh output range

    # numerical sanity check vs f32 XLA reference (bf16 MXU inputs in kernel)
    ref = jax.block_until_ready(jax.jit(_reference_forward)(data, style, params))
    err = float(jnp.max(jnp.abs(out - ref)))
    assert err < 5e-2, err

    print("KERNEL_OK")
</pallas_src>

<mosaic_0001>
module attributes {stable_mosaic.version = 11 : i64} {
  func.func @_fused_conv_kernel(%arg0: i32, %arg1: memref<1x147x256xf32, #tpu.memory_space<vmem>>, %arg2: memref<8x147xf32, #tpu.memory_space<vmem>>, %arg3: memref<1x8x1xf32, #tpu.memory_space<vmem>>, %arg4: memref<1x8x256xf32, #tpu.memory_space<vmem>>) attributes {dimension_semantics = [#tpu.dimension_semantics<parallel>], iteration_bounds = array<i64: 2>, scalar_prefetch = 0 : i64, scratch_operands = 0 : i64, tpu.core_type = #tpu.core_type<tc>, window_params = [{transform_indices = @transform_0, window_bounds = array<i64: 1, 147, 256>}, {pipeline_mode = #tpu.pipeline_mode<synchronous>, transform_indices = @transform_1, window_bounds = array<i64: 8, 147>}, {transform_indices = @transform_2, window_bounds = array<i64: 1, 8, 1>}, {transform_indices = @transform_3, window_bounds = array<i64: 1, 8, 256>}]} {
    %c0 = arith.constant 0 : index
    %c0_0 = arith.constant 0 : index
    %c0_1 = arith.constant 0 : index
    %0 = vector.load %arg1[%c0, %c0_0, %c0_1] : memref<1x147x256xf32, #tpu.memory_space<vmem>>, vector<1x147x256xf32>
    %1 = vector.shape_cast %0 : vector<1x147x256xf32> to vector<147x256xf32>
    %2 = arith.truncf %1 : vector<147x256xf32> to vector<147x256xbf16>
    %c0_2 = arith.constant 0 : index
    %c0_3 = arith.constant 0 : index
    %3 = vector.load %arg2[%c0_2, %c0_3] : memref<8x147xf32, #tpu.memory_space<vmem>>, vector<8x147xf32>
    %4 = arith.truncf %3 : vector<8x147xf32> to vector<8x147xbf16>
    %cst = arith.constant dense<0.000000e+00> : vector<8x256xf32>
    %5 = tpu.matmul %4, %2, %cst {dimension_numbers = #tpu.dot_dimension_numbers<[1], [0], [0], [1], [0, 0, 1, 1], [], []>} : vector<8x147xbf16>, vector<147x256xbf16>, vector<8x256xf32> -> vector<8x256xf32>
    %c0_4 = arith.constant 0 : index
    %c0_5 = arith.constant 0 : index
    %c0_6 = arith.constant 0 : index
    %6 = vector.load %arg3[%c0_4, %c0_5, %c0_6] : memref<1x8x1xf32, #tpu.memory_space<vmem>>, vector<1x8x1xf32>
    %7 = vector.shape_cast %6 : vector<1x8x1xf32> to vector<8x1xf32>
    %8 = vector.broadcast %7 : vector<8x1xf32> to vector<8x256xf32>
    %9 = arith.addf %5, %8 : vector<8x256xf32>
    %cst_7 = arith.constant dense<0.000000e+00> : vector<8xf32>
    %10 = vector.multi_reduction <add>, %9, %cst_7 [1] : vector<8x256xf32> to vector<8xf32>
    %11 = vector.shape_cast %10 : vector<8xf32> to vector<8x1xf32>
    %cst_8 = arith.constant 3.906250e-03 : f32
    %12 = vector.broadcast %cst_8 : f32 to vector<8x1xf32>
    %13 = arith.mulf %11, %12 : vector<8x1xf32>
    %14 = vector.broadcast %13 : vector<8x1xf32> to vector<8x256xf32>
    %15 = arith.subf %9, %14 : vector<8x256xf32>
    %16 = arith.mulf %15, %15 : vector<8x256xf32>
    %cst_9 = arith.constant dense<0.000000e+00> : vector<8xf32>
    %17 = vector.multi_reduction <add>, %16, %cst_9 [1] : vector<8x256xf32> to vector<8xf32>
    %18 = vector.shape_cast %17 : vector<8xf32> to vector<8x1xf32>
    %cst_10 = arith.constant 3.906250e-03 : f32
    %19 = vector.broadcast %cst_10 : f32 to vector<8x1xf32>
    %20 = arith.mulf %18, %19 : vector<8x1xf32>
    %cst_11 = arith.constant 9.99999974E-6 : f32
    %21 = vector.broadcast %cst_11 : f32 to vector<8x1xf32>
    %22 = arith.addf %20, %21 : vector<8x1xf32>
    %23 = math.rsqrt %22 : vector<8x1xf32>
    %24 = vector.broadcast %23 : vector<8x1xf32> to vector<8x256xf32>
    %25 = arith.mulf %15, %24 : vector<8x256xf32>
    %cst_12 = arith.constant 0.000000e+00 : f32
    %26 = vector.broadcast %cst_12 : f32 to vector<8x256xf32>
    %27 = arith.maximumf %25, %26 : vector<8x256xf32>
    %c0_13 = arith.constant 0 : index
    %c0_14 = arith.constant 0 : index
    %c0_15 = arith.constant 0 : index
    %28 = vector.load %arg4[%c0_13, %c0_14, %c0_15] : memref<1x8x256xf32, #tpu.memory_space<vmem>>, vector<1x8x256xf32>
    %29 = vector.shape_cast %28 : vector<1x8x256xf32> to vector<8x256xf32>
    %30 = vector.shape_cast %27 : vector<8x256xf32> to vector<1x8x256xf32>
    tpu.vector_store %arg4[%c0_13, %c0_14, %c0_15], %30 {strides = array<i32>} : memref<1x8x256xf32, #tpu.memory_space<vmem>>, vector<1x8x256xf32>,
    return
  }
  func.func @transform_0(%arg0: i32) -> (i32, i32, i32) {
    %c0_i32 = arith.constant 0 : i32
    %c0_i32_0 = arith.constant 0 : i32
    %c0_i32_1 = arith.constant 0 : i32
    return %arg0, %c0_i32, %c0_i32_0 : i32, i32, i32
  }
  func.func @transform_1(%arg0: i32) -> (i32, i32) {
    %c0_i32 = arith.constant 0 : i32
    %c0_i32_0 = arith.constant 0 : i32
    %c0_i32_1 = arith.constant 0 : i32
    return %c0_i32, %c0_i32_0 : i32, i32
  }
  func.func @transform_2(%arg0: i32) -> (i32, i32, i32) {
    %c0_i32 = arith.constant 0 : i32
    %c0_i32_0 = arith.constant 0 : i32
    %c0_i32_1 = arith.constant 0 : i32
    return %arg0, %c0_i32, %c0_i32_0 : i32, i32, i32
  }
  func.func @transform_3(%arg0: i32) -> (i32, i32, i32) {
    %c0_i32 = arith.constant 0 : i32
    %c0_i32_0 = arith.constant 0 : i32
    %c0_i32_1 = arith.constant 0 : i32
    return %arg0, %c0_i32, %c0_i32_0 : i32, i32, i32
  }
}

module attributes {stable_mosaic.version = 11 : i64} {
  func.func @_fused_conv_kernel(%arg0: i32, %arg1: memref<1x108x64xf32, #tpu.memory_space<vmem>>, %arg2: memref<32x108xf32, #tpu.memory_space<vmem>>, %arg3: memref<1x32x1xf32, #tpu.memory_space<vmem>>, %arg4: memref<1x32x64xf32, #tpu.memory_space<vmem>>) attributes {dimension_semantics = [#tpu.dimension_semantics<parallel>], iteration_bounds = array<i64: 2>, scalar_prefetch = 0 : i64, scratch_operands = 0 : i64, tpu.core_type = #tpu.core_type<tc>, window_params = [{transform_indices = @transform_0, window_bounds = array<i64: 1, 108, 64>}, {pipeline_mode = #tpu.pipeline_mode<synchronous>, transform_indices = @transform_1, window_bounds = array<i64: 32, 108>}, {transform_indices = @transform_2, window_bounds = array<i64: 1, 32, 1>}, {transform_indices = @transform_3, window_bounds = array<i64: 1, 32, 64>}]} {
    %c0 = arith.constant 0 : index
    %c0_0 = arith.constant 0 : index
    %c0_1 = arith.constant 0 : index
    %0 = vector.load %arg1[%c0, %c0_0, %c0_1] : memref<1x108x64xf32, #tpu.memory_space<vmem>>, vector<1x108x64xf32>
    %1 = vector.shape_cast %0 : vector<1x108x64xf32> to vector<108x64xf32>
    %2 = arith.truncf %1 : vector<108x64xf32> to vector<108x64xbf16>
    %c0_2 = arith.constant 0 : index
    %c0_3 = arith.constant 0 : index
    %3 = vector.load %arg2[%c0_2, %c0_3] : memref<32x108xf32, #tpu.memory_space<vmem>>, vector<32x108xf32>
    %4 = arith.truncf %3 : vector<32x108xf32> to vector<32x108xbf16>
    %cst = arith.constant dense<0.000000e+00> : vector<32x64xf32>
    %5 = tpu.matmul %4, %2, %cst {dimension_numbers = #tpu.dot_dimension_numbers<[1], [0], [0], [1], [0, 0, 1, 1], [], []>} : vector<32x108xbf16>, vector<108x64xbf16>, vector<32x64xf32> -> vector<32x64xf32>
    %c0_4 = arith.constant 0 : index
    %c0_5 = arith.constant 0 : index
    %c0_6 = arith.constant 0 : index
    %6 = vector.load %arg3[%c0_4, %c0_5, %c0_6] : memref<1x32x1xf32, #tpu.memory_space<vmem>>, vector<1x32x1xf32>
    %7 = vector.shape_cast %6 : vector<1x32x1xf32> to vector<32x1xf32>
    %8 = vector.broadcast %7 : vector<32x1xf32> to vector<32x64xf32>
    %9 = arith.addf %5, %8 : vector<32x64xf32>
    %cst_7 = arith.constant dense<0.000000e+00> : vector<32xf32>
    %10 = vector.multi_reduction <add>, %9, %cst_7 [1] : vector<32x64xf32> to vector<32xf32>
    %11 = vector.shape_cast %10 : vector<32xf32> to vector<32x1xf32>
    %cst_8 = arith.constant 1.562500e-02 : f32
    %12 = vector.broadcast %cst_8 : f32 to vector<32x1xf32>
    %13 = arith.mulf %11, %12 : vector<32x1xf32>
    %14 = vector.broadcast %13 : vector<32x1xf32> to vector<32x64xf32>
    %15 = arith.subf %9, %14 : vector<32x64xf32>
    %16 = arith.mulf %15, %15 : vector<32x64xf32>
    %cst_9 = arith.constant dense<0.000000e+00> : vector<32xf32>
    %17 = vector.multi_reduction <add>, %16, %cst_9 [1] : vector<32x64xf32> to vector<32xf32>
    %18 = vector.shape_cast %17 : vector<32xf32> to vector<32x1xf32>
    %cst_10 = arith.constant 1.562500e-02 : f32
    %19 = vector.broadcast %cst_10 : f32 to vector<32x1xf32>
    %20 = arith.mulf %18, %19 : vector<32x1xf32>
    %cst_11 = arith.constant 9.99999974E-6 : f32
    %21 = vector.broadcast %cst_11 : f32 to vector<32x1xf32>
    %22 = arith.addf %20, %21 : vector<32x1xf32>
    %23 = math.rsqrt %22 : vector<32x1xf32>
    %24 = vector.broadcast %23 : vector<32x1xf32> to vector<32x64xf32>
    %25 = arith.mulf %15, %24 : vector<32x64xf32>
    %cst_12 = arith.constant 0.000000e+00 : f32
    %26 = vector.broadcast %cst_12 : f32 to vector<32x64xf32>
    %27 = arith.maximumf %25, %26 : vector<32x64xf32>
    %c0_13 = arith.constant 0 : index
    %c0_14 = arith.constant 0 : index
    %c0_15 = arith.constant 0 : index
    %28 = vector.load %arg4[%c0_13, %c0_14, %c0_15] : memref<1x32x64xf32, #tpu.memory_space<vmem>>, vector<1x32x64xf32>
    %29 = vector.shape_cast %28 : vector<1x32x64xf32> to vector<32x64xf32>
    %30 = vector.shape_cast %27 : vector<32x64xf32> to vector<1x32x64xf32>
    tpu.vector_store %arg4[%c0_13, %c0_14, %c0_15], %30 {strides = array<i32>} : memref<1x32x64xf32, #tpu.memory_space<vmem>>, vector<1x32x64xf32>,
    return
  }
  func.func @transform_0(%arg0: i32) -> (i32, i32, i32) {
    %c0_i32 = arith.constant 0 : i32
    %c0_i32_0 = arith.constant 0 : i32
    %c0_i32_1 = arith.constant 0 : i32
    return %arg0, %c0_i32, %c0_i32_0 : i32, i32, i32
  }
  func.func @transform_1(%arg0: i32) -> (i32, i32) {
    %c0_i32 = arith.constant 0 : i32
    %c0_i32_0 = arith.constant 0 : i32
    %c0_i32_1 = arith.constant 0 : i32
    return %c0_i32, %c0_i32_0 : i32, i32
  }
  func.func @transform_2(%arg0: i32) -> (i32, i32, i32) {
    %c0_i32 = arith.constant 0 : i32
    %c0_i32_0 = arith.constant 0 : i32
    %c0_i32_1 = arith.constant 0 : i32
    return %arg0, %c0_i32, %c0_i32_0 : i32, i32, i32
  }
  func.func @transform_3(%arg0: i32) -> (i32, i32, i32) {
    %c0_i32 = arith.constant 0 : i32
    %c0_i32_0 = arith.constant 0 : i32
    %c0_i32_1 = arith.constant 0 : i32
    return %arg0, %c0_i32, %c0_i32_0 : i32, i32, i32
  }
}

module attributes {stable_mosaic.version = 11 : i64} {
  func.func @_fused_conv_kernel(%arg0: i32, %arg1: memref<1x144x64xf32, #tpu.memory_space<vmem>>, %arg2: memref<32x144xf32, #tpu.memory_space<vmem>>, %arg3: memref<1x32x1xf32, #tpu.memory_space<vmem>>, %arg4: memref<1x32x64xf32, #tpu.memory_space<vmem>>) attributes {dimension_semantics = [#tpu.dimension_semantics<parallel>], iteration_bounds = array<i64: 2>, scalar_prefetch = 0 : i64, scratch_operands = 0 : i64, tpu.core_type = #tpu.core_type<tc>, window_params = [{transform_indices = @transform_0, window_bounds = array<i64: 1, 144, 64>}, {pipeline_mode = #tpu.pipeline_mode<synchronous>, transform_indices = @transform_1, window_bounds = array<i64: 32, 144>}, {transform_indices = @transform_2, window_bounds = array<i64: 1, 32, 1>}, {transform_indices = @transform_3, window_bounds = array<i64: 1, 32, 64>}]} {
    %c0 = arith.constant 0 : index
    %c0_0 = arith.constant 0 : index
    %c0_1 = arith.constant 0 : index
    %0 = vector.load %arg1[%c0, %c0_0, %c0_1] : memref<1x144x64xf32, #tpu.memory_space<vmem>>, vector<1x144x64xf32>
    %1 = vector.shape_cast %0 : vector<1x144x64xf32> to vector<144x64xf32>
    %2 = arith.truncf %1 : vector<144x64xf32> to vector<144x64xbf16>
    %c0_2 = arith.constant 0 : index
    %c0_3 = arith.constant 0 : index
    %3 = vector.load %arg2[%c0_2, %c0_3] : memref<32x144xf32, #tpu.memory_space<vmem>>, vector<32x144xf32>
    %4 = arith.truncf %3 : vector<32x144xf32> to vector<32x144xbf16>
    %cst = arith.constant dense<0.000000e+00> : vector<32x64xf32>
    %5 = tpu.matmul %4, %2, %cst {dimension_numbers = #tpu.dot_dimension_numbers<[1], [0], [0], [1], [0, 0, 1, 1], [], []>} : vector<32x144xbf16>, vector<144x64xbf16>, vector<32x64xf32> -> vector<32x64xf32>
    %c0_4 = arith.constant 0 : index
    %c0_5 = arith.constant 0 : index
    %c0_6 = arith.constant 0 : index
    %6 = vector.load %arg3[%c0_4, %c0_5, %c0_6] : memref<1x32x1xf32, #tpu.memory_space<vmem>>, vector<1x32x1xf32>
    %7 = vector.shape_cast %6 : vector<1x32x1xf32> to vector<32x1xf32>
    %8 = vector.broadcast %7 : vector<32x1xf32> to vector<32x64xf32>
    %9 = arith.addf %5, %8 : vector<32x64xf32>
    %10 = vector.extract_strided_slice %9 {offsets = [0, 0], sizes = [8, 64], strides = [1, 1]} : vector<32x64xf32> to vector<8x64xf32>
    %11 = vector.extract_strided_slice %9 {offsets = [8, 0], sizes = [8, 64], strides = [1, 1]} : vector<32x64xf32> to vector<8x64xf32>
    %12 = vector.extract_strided_slice %9 {offsets = [16, 0], sizes = [8, 64], strides = [1, 1]} : vector<32x64xf32> to vector<8x64xf32>
    %13 = vector.extract_strided_slice %9 {offsets = [24, 0], sizes = [8, 64], strides = [1, 1]} : vector<32x64xf32> to vector<8x64xf32>
    %14 = arith.addf %10, %11 : vector<8x64xf32>
    %15 = arith.addf %14, %12 : vector<8x64xf32>
    %16 = arith.addf %15, %13 : vector<8x64xf32>
    %cst_7 = arith.constant dense<0.000000e+00> : vector<8xf32>
    %17 = vector.multi_reduction <add>, %16, %cst_7 [1] : vector<8x64xf32> to vector<8xf32>
    %18 = vector.shape_cast %17 : vector<8xf32> to vector<8x1xf32>
    %cst_8 = arith.constant 3.906250e-03 : f32
    %19 = vector.broadcast %cst_8 : f32 to vector<8x1xf32>
    %20 = arith.mulf %18, %19 : vector<8x1xf32>
    %21 = vector.broadcast %20 : vector<8x1xf32> to vector<8x64xf32>
    %22 = arith.subf %10, %21 : vector<8x64xf32>
    %23 = vector.broadcast %20 : vector<8x1xf32> to vector<8x64xf32>
    %24 = arith.subf %11, %23 : vector<8x64xf32>
    %25 = vector.broadcast %20 : vector<8x1xf32> to vector<8x64xf32>
    %26 = arith.subf %12, %25 : vector<8x64xf32>
    %27 = vector.broadcast %20 : vector<8x1xf32> to vector<8x64xf32>
    %28 = arith.subf %13, %27 : vector<8x64xf32>
    %29 = arith.mulf %22, %22 : vector<8x64xf32>
    %cst_9 = arith.constant dense<0.000000e+00> : vector<8xf32>
    %30 = vector.multi_reduction <add>, %29, %cst_9 [1] : vector<8x64xf32> to vector<8xf32>
    %31 = vector.shape_cast %30 : vector<8xf32> to vector<8x1xf32>
    %32 = arith.mulf %24, %24 : vector<8x64xf32>
    %cst_10 = arith.constant dense<0.000000e+00> : vector<8xf32>
    %33 = vector.multi_reduction <add>, %32, %cst_10 [1] : vector<8x64xf32> to vector<8xf32>
    %34 = vector.shape_cast %33 : vector<8xf32> to vector<8x1xf32>
    %35 = arith.addf %31, %34 : vector<8x1xf32>
    %36 = arith.mulf %26, %26 : vector<8x64xf32>
    %cst_11 = arith.constant dense<0.000000e+00> : vector<8xf32>
    %37 = vector.multi_reduction <add>, %36, %cst_11 [1] : vector<8x64xf32> to vector<8xf32>
    %38 = vector.shape_cast %37 : vector<8xf32> to vector<8x1xf32>
    %39 = arith.addf %35, %38 : vector<8x1xf32>
    %40 = arith.mulf %28, %28 : vector<8x64xf32>
    %cst_12 = arith.constant dense<0.000000e+00> : vector<8xf32>
    %41 = vector.multi_reduction <add>, %40, %cst_12 [1] : vector<8x64xf32> to vector<8xf32>
    %42 = vector.shape_cast %41 : vector<8xf32> to vector<8x1xf32>
    %43 = arith.addf %39, %42 : vector<8x1xf32>
    %cst_13 = arith.constant 3.906250e-03 : f32
    %44 = vector.broadcast %cst_13 : f32 to vector<8x1xf32>
    %45 = arith.mulf %43, %44 : vector<8x1xf32>
    %cst_14 = arith.constant 9.99999974E-6 : f32
    %46 = vector.broadcast %cst_14 : f32 to vector<8x1xf32>
    %47 = arith.addf %45, %46 : vector<8x1xf32>
    %48 = math.rsqrt %47 : vector<8x1xf32>
    %49 = vector.broadcast %48 : vector<8x1xf32> to vector<8x64xf32>
    %50 = arith.mulf %22, %49 : vector<8x64xf32>
    %cst_15 = arith.constant 0.000000e+00 : f32
    %51 = vector.broadcast %cst_15 : f32 to vector<8x64xf32>
    %52 = arith.maximumf %50, %51 : vector<8x64xf32>
    %53 = vector.broadcast %48 : vector<8x1xf32> to vector<8x64xf32>
    %54 = arith.mulf %24, %53 : vector<8x64xf32>
    %cst_16 = arith.constant 0.000000e+00 : f32
    %55 = vector.broadcast %cst_16 : f32 to vector<8x64xf32>
    %56 = arith.maximumf %54, %55 : vector<8x64xf32>
    %57 = vector.broadcast %48 : vector<8x1xf32> to vector<8x64xf32>
    %58 = arith.mulf %26, %57 : vector<8x64xf32>
    %cst_17 = arith.constant 0.000000e+00 : f32
    %59 = vector.broadcast %cst_17 : f32 to vector<8x64xf32>
    %60 = arith.maximumf %58, %59 : vector<8x64xf32>
    %61 = vector.broadcast %48 : vector<8x1xf32> to vector<8x64xf32>
    %62 = arith.mulf %28, %61 : vector<8x64xf32>
    %cst_18 = arith.constant 0.000000e+00 : f32
    %63 = vector.broadcast %cst_18 : f32 to vector<8x64xf32>
    %64 = arith.maximumf %62, %63 : vector<8x64xf32>
    %65 = tpu.concatenate %52, %56, %60, %64 in 0 : vector<8x64xf32>, vector<8x64xf32>, vector<8x64xf32>, vector<8x64xf32> -> vector<32x64xf32>
    %c0_19 = arith.constant 0 : index
    %c0_20 = arith.constant 0 : index
    %c0_21 = arith.constant 0 : index
    %66 = vector.load %arg4[%c0_19, %c0_20, %c0_21] : memref<1x32x64xf32, #tpu.memory_space<vmem>>, vector<1x32x64xf32>
    %67 = vector.shape_cast %66 : vector<1x32x64xf32> to vector<32x64xf32>
    %68 = vector.shape_cast %65 : vector<32x64xf32> to vector<1x32x64xf32>
    tpu.vector_store %arg4[%c0_19, %c0_20, %c0_21], %68 {strides = array<i32>} : memref<1x32x64xf32, #tpu.memory_space<vmem>>, vector<1x32x64xf32>,
    return
  }
  func.func @transform_0(%arg0: i32) -> (i32, i32, i32) {
    %c0_i32 = arith.constant 0 : i32
    %c0_i32_0 = arith.constant 0 : i32
    %c0_i32_1 = arith.constant 0 : i32
    return %arg0, %c0_i32, %c0_i32_0 : i32, i32, i32
  }
  func.func @transform_1(%arg0: i32) -> (i32, i32) {
    %c0_i32 = arith.constant 0 : i32
    %c0_i32_0 = arith.constant 0 : i32
    %c0_i32_1 = arith.constant 0 : i32
    return %c0_i32, %c0_i32_0 : i32, i32
  }
  func.func @transform_2(%arg0: i32) -> (i32, i32, i32) {
    %c0_i32 = arith.constant 0 : i32
    %c0_i32_0 = arith.constant 0 : i32
    %c0_i32_1 = arith.constant 0 : i32
    return %arg0, %c0_i32, %c0_i32_0 : i32, i32, i32
  }
  func.func @transform_3(%arg0: i32) -> (i32, i32, i32) {
    %c0_i32 = arith.constant 0 : i32
    %c0_i32_0 = arith.constant 0 : i32
    %c0_i32_1 = arith.constant 0 : i32
    return %arg0, %c0_i32, %c0_i32_0 : i32, i32, i32
  }
}

module attributes {stable_mosaic.version = 11 : i64} {
  func.func @_fused_conv_kernel(%arg0: i32, %arg1: memref<1x392x256xf32, #tpu.memory_space<vmem>>, %arg2: memref<3x392xf32, #tpu.memory_space<vmem>>, %arg3: memref<1x3x1xf32, #tpu.memory_space<vmem>>, %arg4: memref<1x3x256xf32, #tpu.memory_space<vmem>>) attributes {dimension_semantics = [#tpu.dimension_semantics<parallel>], iteration_bounds = array<i64: 2>, scalar_prefetch = 0 : i64, scratch_operands = 0 : i64, tpu.core_type = #tpu.core_type<tc>, window_params = [{transform_indices = @transform_0, window_bounds = array<i64: 1, 392, 256>}, {pipeline_mode = #tpu.pipeline_mode<synchronous>, transform_indices = @transform_1, window_bounds = array<i64: 3, 392>}, {transform_indices = @transform_2, window_bounds = array<i64: 1, 3, 1>}, {transform_indices = @transform_3, window_bounds = array<i64: 1, 3, 256>}]} {
    %c0 = arith.constant 0 : index
    %c0_0 = arith.constant 0 : index
    %c0_1 = arith.constant 0 : index
    %0 = vector.load %arg1[%c0, %c0_0, %c0_1] : memref<1x392x256xf32, #tpu.memory_space<vmem>>, vector<1x392x256xf32>
    %1 = vector.shape_cast %0 : vector<1x392x256xf32> to vector<392x256xf32>
    %2 = arith.truncf %1 : vector<392x256xf32> to vector<392x256xbf16>
    %c0_2 = arith.constant 0 : index
    %c0_3 = arith.constant 0 : index
    %3 = vector.load %arg2[%c0_2, %c0_3] : memref<3x392xf32, #tpu.memory_space<vmem>>, vector<3x392xf32>
    %4 = arith.truncf %3 : vector<3x392xf32> to vector<3x392xbf16>
    %cst = arith.constant dense<0.000000e+00> : vector<3x256xf32>
    %5 = tpu.matmul %4, %2, %cst {dimension_numbers = #tpu.dot_dimension_numbers<[1], [0], [0], [1], [0, 0, 1, 1], [], []>} : vector<3x392xbf16>, vector<392x256xbf16>, vector<3x256xf32> -> vector<3x256xf32>
    %c0_4 = arith.constant 0 : index
    %c0_5 = arith.constant 0 : index
    %c0_6 = arith.constant 0 : index
    %6 = vector.load %arg3[%c0_4, %c0_5, %c0_6] : memref<1x3x1xf32, #tpu.memory_space<vmem>>, vector<1x3x1xf32>
    %7 = vector.shape_cast %6 : vector<1x3x1xf32> to vector<3x1xf32>
    %8 = vector.broadcast %7 : vector<3x1xf32> to vector<3x256xf32>
    %9 = arith.addf %5, %8 : vector<3x256xf32>
    %10 = math.tanh %9 : vector<3x256xf32>
    %c0_7 = arith.constant 0 : index
    %c0_8 = arith.constant 0 : index
    %c0_9 = arith.constant 0 : index
    %11 = vector.load %arg4[%c0_7, %c0_8, %c0_9] : memref<1x3x256xf32, #tpu.memory_space<vmem>>, vector<1x3x256xf32>
    %12 = vector.shape_cast %11 : vector<1x3x256xf32> to vector<3x256xf32>
    %13 = vector.shape_cast %10 : vector<3x256xf32> to vector<1x3x256xf32>
    tpu.vector_store %arg4[%c0_7, %c0_8, %c0_9], %13 {strides = array<i32>} : memref<1x3x256xf32, #tpu.memory_space<vmem>>, vector<1x3x256xf32>,
    return
  }
  func.func @transform_0(%arg0: i32) -> (i32, i32, i32) {
    %c0_i32 = arith.constant 0 : i32
    %c0_i32_0 = arith.constant 0 : i32
    %c0_i32_1 = arith.constant 0 : i32
    return %arg0, %c0_i32, %c0_i32_0 : i32, i32, i32
  }
  func.func @transform_1(%arg0: i32) -> (i32, i32) {
    %c0_i32 = arith.constant 0 : i32
    %c0_i32_0 = arith.constant 0 : i32
    %c0_i32_1 = arith.constant 0 : i32
    return %c0_i32, %c0_i32_0 : i32, i32
  }
  func.func @transform_2(%arg0: i32) -> (i32, i32, i32) {
    %c0_i32 = arith.constant 0 : i32
    %c0_i32_0 = arith.constant 0 : i32
    %c0_i32_1 = arith.constant 0 : i32
    return %arg0, %c0_i32, %c0_i32_0 : i32, i32, i32
  }
  func.func @transform_3(%arg0: i32) -> (i32, i32, i32) {
    %c0_i32 = arith.constant 0 : i32
    %c0_i32_0 = arith.constant 0 : i32
    %c0_i32_1 = arith.constant 0 : i32
    return %arg0, %c0_i32, %c0_i32_0 : i32, i32, i32
  }
}

</mosaic_0001>

<bundles_post_ra>
// kernel: stretch_net_forward.4
= control target key start
LH: loop header
LB: loop body
LE: loop exit
PB: predicated region body
PF: predicated region fallthrough
CT: control target
= control target key end

     0   :  { %s456_s12 = smov 0   ;;  %s527_s0 = inlined_call_operand.vmem [shape: f32[2,147,256], index: 0, kind: input, shape index: {}]   ;;  %s528_s1 = inlined_call_operand.vmem [shape: f32[8,147], index: 1, kind: input, shape index: {}]   ;;  %s529_s2 = inlined_call_operand.vmem [shape: f32[2,8,1], index: 2, kind: input, shape index: {}]   ;;  %s530_s3 = inlined_call_operand.vmem [shape: f32[2,8,256], index: 3, kind: output, shape index: {}]  }
   0x1 LB: > { %s399_s13 = sadd.s32 4294967295, %s432_s12   ;;  %p403_p0 = scmp.ge.s32.totalorder %s432_s12, 1  ;;  %s432_s12 = sphi %s456_s12, %s13_s12  }
   0x2   : > { %p146_p1 = scmp.lt.s32.totalorder %s432_s12, 3 }
   0x4   : > { %p147_p2 = pnand %p403_p0, %p146_p1 }
   0x5   : > { %p174_p3 = scmp.lt.s32.totalorder (!%p147_p2), %s399_s13, 1  ;;  %v248_v0 = vld [vmem:[%s528_s1 + $0x8] sm:$0xff] (!%p147_p2)  ;;  %vm257_vm0 = vcmask (!%p147_p2), 154624   ;;  %v434_v2 = vmov (!%p147_p2), 0   ;;  %vm261_vm1 = vcmask (!%p147_p2), 1040384   ;;  %vm262_vm2 = vcmask (!%p147_p2), 1041408  }
   0x6   : > { %150 = sbr.rel (%p147_p2) target bundleno = 589 (0x24d), region = 32  ;;  %v250_v1 = vpack.c.bf16 (!%p147_p2), %v248_v0, %v248_v0  ;;  %423 = vset.pattern.permute.xlu0 (!%p147_p2), %v434_v2  ;;  %v435_v54 = vmov (!%p147_p2), 65535  }
   0x7   : > { %v263_v55 = vsel (!%p147_p2), %vm261_vm1, 4294967295, %v435_v54 }
   0x8   : > { %408 = vmatprep.mubr.msk.bf16.mxu0 (!%p147_p2), %vm257_vm0, %v250_v1  ;;  %v264_v62 = vsel (!%p147_p2), %vm262_vm2, %v263_v55, 0 }
   0xd   : > { %s532_s13 = smov (!%p174_p3, %s399_s13), 1 }
   0xe   : > { %s412_s16 = smul.u32 304, %s532_s13  ;;  %s405_s17 = sshll.u32 %s532_s13, 3 }
   0xf   : > { %s182_s20 = scalar_lea.vmem %s529_s2, %s405_s17  ;;  %s411_s26 = sshll.u32 %s532_s13, 4 }
  0x10   : > { %s477_s23 = scalar_lea.vmem %s527_s0, %s412_s16  ;;  %v251_v3 = vld [vmem:[%s182_s20] sm:$0xff]  ;;  %s187_s29 = scalar_lea.vmem %s530_s3, %s411_s26 }
  0x11   : > { %v190_v4 = vld [vmem:[%s477_s23 + $0x8] sm:$0xff]  ;;  %v192_v5 = vld [vmem:[%s477_s23 + $0x18] sm:$0xff]  ;;  %v189_v6 = vld [vmem:[%s477_s23] sm:$0xff]  ;;  %254 = vperm.xlu0 %423, %v251_v3  }
  0x12   : > { %v228_v7 = vpack.c.bf16 %v192_v5, %v190_v4  ;;  %v191_v8 = vld [vmem:[%s477_s23 + $0x10] sm:$0xff]  ;;  %v194_v9 = vld [vmem:[%s477_s23 + $0x28] sm:$0xff]  ;;  %v196_v10 = vld [vmem:[%s477_s23 + $0x38] sm:$0xff] }
  0x13   : > { %v227_v11 = vpack.c.bf16 %v191_v8, %v189_v6  ;;  %v230_v12 = vpack.c.bf16 %v196_v10, %v194_v9  ;;  %v193_v13 = vld [vmem:[%s477_s23 + $0x20] sm:$0xff]  ;;  %v195_v14 = vld [vmem:[%s477_s23 + $0x30] sm:$0xff]  ;;  %v198_v15 = vld [vmem:[%s477_s23 + $0x48] sm:$0xff] }
  0x14   : > { %271 = vmatprep.subr.bf16.mxu0 %v228_v7  ;;  %v200_v16 = vld [vmem:[%s477_s23 + $0x58] sm:$0xff]  ;;  %v229_v17 = vpack.c.bf16 %v195_v14, %v193_v13  ;;  %v197_v19 = vld [vmem:[%s477_s23 + $0x40] sm:$0xff]  ;;  %v199_v20 = vld [vmem:[%s477_s23 + $0x50] sm:$0xff] }
  0x15   : > { %272 = vmatpush1.bf16.msra.mxu0 %v227_v11  ;;  %v232_v18 = vpack.c.bf16 %v200_v16, %v198_v15  ;;  %v202_v21 = vld [vmem:[%s477_s23 + $0x68] sm:$0xff]  ;;  %v204_v22 = vld [vmem:[%s477_s23 + $0x78] sm:$0xff]  ;;  %v231_v23 = vpack.c.bf16 %v199_v20, %v197_v19  ;;  %v201_v25 = vld [vmem:[%s477_s23 + $0x60] sm:$0xff] }
  0x16   : > { %273 = vmatprep.subr.bf16.mxu0 %v230_v12  ;;  %v234_v24 = vpack.c.bf16 %v204_v22, %v202_v21  ;;  %v203_v26 = vld [vmem:[%s477_s23 + $0x70] sm:$0xff]  ;;  %v206_v27 = vld [vmem:[%s477_s23 + $0x88] sm:$0xff]  ;;  %v208_v28 = vld [vmem:[%s477_s23 + $0x98] sm:$0xff] }
  0x17   : > { %v233_v29 = vpack.c.bf16 %v203_v26, %v201_v25  ;;  %v236_v30 = vpack.c.bf16 %v208_v28, %v206_v27  ;;  %v205_v31 = vld [vmem:[%s477_s23 + $0x80] sm:$0xff]  ;;  %v207_v32 = vld [vmem:[%s477_s23 + $0x90] sm:$0xff]  ;;  %v210_v33 = vld [vmem:[%s477_s23 + $0xa8] sm:$0xff] }
  0x18   : > { %v212_v34 = vld [vmem:[%s477_s23 + $0xb8] sm:$0xff]  ;;  %v235_v35 = vpack.c.bf16 %v207_v32, %v205_v31  ;;  %v209_v37 = vld [vmem:[%s477_s23 + $0xa0] sm:$0xff]  ;;  %v211_v38 = vld [vmem:[%s477_s23 + $0xb0] sm:$0xff] }
  0x19   : > { %274 = vmatpush1.bf16.msra.mxu0 %v229_v17  ;;  %v238_v36 = vpack.c.bf16 %v212_v34, %v210_v33  ;;  %v214_v39 = vld [vmem:[%s477_s23 + $0xc8] sm:$0xff]  ;;  %v216_v40 = vld [vmem:[%s477_s23 + $0xd8] sm:$0xff]  ;;  %v237_v41 = vpack.c.bf16 %v211_v38, %v209_v37  ;;  %v213_v43 = vld [vmem:[%s477_s23 + $0xc0] sm:$0xff] }
  0x1a   : > { %275 = vmatprep.subr.bf16.mxu0 %v232_v18  ;;  %v240_v42 = vpack.c.bf16 %v216_v40, %v214_v39  ;;  %v215_v44 = vld [vmem:[%s477_s23 + $0xd0] sm:$0xff]  ;;  %v218_v45 = vld [vmem:[%s477_s23 + $0xe8] sm:$0xff]  ;;  %v220_v46 = vld [vmem:[%s477_s23 + $0xf8] sm:$0xff] }
  0x1b   : > { %v239_v47 = vpack.c.bf16 %v215_v44, %v213_v43  ;;  %v242_v48 = vpack.c.bf16 %v220_v46, %v218_v45  ;;  %v217_v49 = vld [vmem:[%s477_s23 + $0xe0] sm:$0xff]  ;;  %v219_v50 = vld [vmem:[%s477_s23 + $0xf0] sm:$0xff]  ;;  %v222_v51 = vld [vmem:[%s477_s23 + $0x108] sm:$0xff] }
  0x1c   : > { %v224_v52 = vld [vmem:[%s477_s23 + $0x118] sm:$0xff]  ;;  %v226_v53 = vld [vmem:[%s477_s23 + $0x128] sm:$0x7]  ;;  %v241_v56 = vpack.c.bf16 %v219_v50, %v217_v49  ;;  %v221_v58 = vld [vmem:[%s477_s23 + $0x100] sm:$0xff] }
  0x1d   : > { %276 = vmatpush1.bf16.msra.mxu0 %v231_v23  ;;  %v244_v57 = vpack.c.bf16 %v224_v52, %v222_v51  ;;  %v223_v59 = vld [vmem:[%s477_s23 + $0x110] sm:$0xff]  ;;  %v246_v60 = vpack.c.bf16 %v226_v53, %v226_v53  ;;  %v225_v61 = vld [vmem:[%s477_s23 + $0x120] sm:$0x7] }
  0x1e   : > { %277 = vmatprep.subr.bf16.mxu0 %v234_v24  ;;  %v243_v63 = vpack.c.bf16 %v223_v59, %v221_v58  ;;  %v245_v0 = vpack.c.bf16 %v225_v61, %v225_v61  ;;  %v247_v3 = vld [vmem:[%s528_s1] sm:$0xff] }
  0x1f   : > { %v269_v1 = vand.u32 %v264_v62, %v246_v60  ;;  %v249_v4 = vpack.c.bf16 %v247_v3, %v247_v3 }
  0x20   : > { %v266_v2 = vand.u32 %v264_v62, %v245_v0 }
  0x21   : > { %278 = vmatpush1.bf16.msra.mxu0 %v233_v29 }
  0x22   : > { %279 = vmatprep.subr.bf16.mxu0 %v236_v30 }
  0x25   : > { %280 = vmatpush1.bf16.msra.mxu0 %v235_v35 }
  0x26   : > { %281 = vmatprep.subr.bf16.mxu0 %v238_v36 }
  0x29   : > { %282 = vmatpush1.bf16.msra.mxu0 %v237_v41 }
  0x2a   : > { %283 = vmatprep.subr.bf16.mxu0 %v240_v42 }
  0x2d   : > { %284 = vmatpush1.bf16.msra.mxu0 %v239_v47 }
  0x2e   : > { %285 = vmatprep.subr.bf16.mxu0 %v242_v48 }
  0x31   : > { %286 = vmatpush1.bf16.msra.mxu0 %v241_v56 }
  0x32   : > { %287 = vmatprep.subr.bf16.mxu0 %v244_v57 }
  0x35   : > { %288 = vmatpush1.bf16.msra.mxu0 %v243_v63 }
  0x36   : > { %289 = vmatprep.subr.bf16.mxu0 %v269_v1 }
  0x39   : > { %290 = vmatpush1.bf16.msra.mxu0 %v266_v2 }
  0x3c   : > { %304 = vmatmul.mubr.bf16.vlgmr.msra.gmra.mrb[0].mxu0 %v249_v4 }
  0x90   : > { %v255_v5 = vpop.permute.xlu0 %254 }
 0x10f   : > { %v305_v6 = vpop.f32.mrb[0].mxu0 }
 0x110   : > { %v306_v7 = vadd.f32 %v305_v6, %v255_v5  ;;  %v307_v8 = vpop.f32.mrb[1].mxu0 }
 0x111   : > { %v308_v9 = vadd.f32 %v307_v8, %v255_v5  ;;  %v309_v10 = vpop.f32.mrb[2].mxu0 }
 0x112   : > { %v310_v11 = vpop.f32.mrb[3].mxu0 }
 0x113   : > { %v312_v12 = vadd.f32 %v308_v9, %v306_v7 }
 0x115   : > { %313 = vadd.xlane.f32.xlu0 %v312_v12 }
 0x1a2   : > { %v314_v13 = vpop.xlane.xlu0 %313 }
 0x1a3   : > { %v315_v14 = vmul.f32 0.00390625, %v314_v13 }
 0x1a5   : > { %v316_v15 = vsub.f32 %v306_v7, %v315_v14  ;;  %v317_v16 = vsub.f32 %v308_v9, %v315_v14 }
 0x1a7   : > { %v318_v17 = vmul.f32 %v316_v15, %v316_v15  ;;  %v319_v18 = vmul.f32 %v317_v16, %v317_v16 }
 0x1a9   : > { %v320_v19 = vadd.f32 %v319_v18, %v318_v17 }
 0x1ab   : > { %321 = vadd.xlane.f32.xlu1 %v320_v19 }
 0x238   : > { %v322_v20 = vpop.xlane.xlu1 %321 }
 0x239   : > { %v323_v21 = vmul.f32 0.00390625, %v322_v20 }
 0x23b   : > { %v324_v22 = vadd.f32 1e-05, %v323_v21 }
 0x23d   : > { %424 = vrsqrt.f32 %v324_v22 }
 0x247   : > { %v425_v23 = vpop.eup %424 }
 0x248   : > { %v326_v24 = vmul.f32 %v425_v23, %v316_v15  ;;  %v327_v25 = vmul.f32 %v425_v23, %v317_v16 }
 0x24a   : > { %v328_v26 = vmax.f32 %v326_v24, 0.0  ;;  %v329_v27 = vmax.f32 %v327_v25, 0.0 }
 0x24c   : > { %330 = vst [vmem:[%s187_s29] sm:$0xff] %v328_v26  ;;  %331 = vst [vmem:[%s187_s29 + $0x8] sm:$0xff] %v329_v27 }
 0x24d PF: > { %s13_s12 = sadd.s32 1, %s432_s12  }
 0x24e   : > { %p10_p4 = scmp.ge.s32.totalorder %s13_s12, 4  }
 0x250   :  { %12 = sbr.rel (!%p10_p4) target bundleno = 1 (0x1), region = 65 }

// kernel: stretch_net_forward.5
= control target key start
LH: loop header
LB: loop body
LE: loop exit
PB: predicated region body
PF: predicated region fallthrough
CT: control target
= control target key end

     0   :  { %s524_s12 = smov 0   ;;  %s594_s0 = inlined_call_operand.vmem [shape: f32[2,108,64], index: 0, kind: input, shape index: {}]   ;;  %s595_s1 = inlined_call_operand.vmem [shape: f32[32,108], index: 1, kind: input, shape index: {}]   ;;  %s596_s2 = inlined_call_operand.vmem [shape: f32[2,32,1], index: 2, kind: input, shape index: {}]   ;;  %s597_s3 = inlined_call_operand.vmem [shape: f32[2,32,64], index: 3, kind: output, shape index: {}]  }
   0x1 LB: > { %s431_s13 = sadd.s32 4294967295, %s501_s12   ;;  %p435_p0 = scmp.ge.s32.totalorder %s501_s12, 1  ;;  %s501_s12 = sphi %s524_s12, %s13_s12  }
   0x2   : > { %p147_p1 = scmp.lt.s32.totalorder %s501_s12, 3 }
   0x4   : > { %p148_p2 = pnand %p435_p0, %p147_p1 }
   0x5   : > { %p176_p3 = scmp.lt.s32.totalorder (!%p148_p2), %s431_s13, 1  ;;  %v213_v0 = vld [vmem:[%s595_s1] sm:$0xff] (!%p148_p2)  ;;  %v214_v1 = vld [vmem:[%s595_s1 + $0x8] sm:$0xff] (!%p148_p2)  ;;  %vm243_vm0 = vcmask (!%p148_p2), 883712   ;;  %v503_v3 = vmov (!%p148_p2), 0   ;;  %vm250_vm1 = vcmask (!%p148_p2), 1045504  }
   0x6   : > { %151 = sbr.rel (%p148_p2) target bundleno = 583 (0x247), region = 32  ;;  %v217_v2 = vpack.c.bf16 (!%p148_p2), %v214_v1, %v213_v0  ;;  %485 = vset.pattern.permute.xlu0 (!%p148_p2), %v503_v3  ;;  %486 = vset.pattern.permute.xlu1 (!%p148_p2), %v503_v3  ;;  %v215_v29 = vld [vmem:[%s595_s1 + $0x10] sm:$0xff] (!%p148_p2)  ;;  %v216_v30 = vld [vmem:[%s595_s1 + $0x18] sm:$0xff] (!%p148_p2)  ;;  %vm303_vm2 = vcmask (!%p148_p2), 523264  }
   0x7   : > { %v218_v32 = vpack.c.bf16 (!%p148_p2), %v216_v30, %v215_v29 }
   0x8   : > { %470 = vmatprep.mubr.msk.bf16.mxu0 (!%p148_p2), %vm243_vm0, %v217_v2 }
   0xd   : > { %s599_s13 = smov (!%p176_p3, %s431_s13), 1 }
   0xe   : > { %s475_s18 = smul.u32 112, %s599_s13  ;;  %s445_s19 = sshll.u32 %s599_s13, 5 }
   0xf   : > { %s185_s22 = scalar_lea.vmem %s596_s2, %s445_s19  ;;  %s190_s5 = scalar_lea.vmem %s597_s3, %s445_s19 }
  0x10   : > { %s551_s25 = scalar_lea.vmem %s594_s0, %s475_s18  ;;  %v219_v4 = vld [vmem:[%s185_s22] sm:$0xff]  ;;  %v221_v5 = vld [vmem:[%s185_s22 + $0x10] sm:$0xff]  ;;  %v220_v11 = vld [vmem:[%s185_s22 + $0x8] sm:$0xff] }
  0x11   : > { %v192_v6 = vld [vmem:[%s551_s25] sm:$0xff]  ;;  %v193_v7 = vld [vmem:[%s551_s25 + $0x8] sm:$0xff]  ;;  %v194_v8 = vld [vmem:[%s551_s25 + $0x10] sm:$0xff]  ;;  %225 = vperm.xlu0 %485, %v219_v4   ;;  %235 = vperm.xlu1 %486, %v221_v5  }
  0x12   : > { %v206_v9 = vpack.c.bf16 %v193_v7, %v192_v6  ;;  %v195_v10 = vld [vmem:[%s551_s25 + $0x18] sm:$0xff]  ;;  %v196_v13 = vld [vmem:[%s551_s25 + $0x20] sm:$0xff]  ;;  %v197_v14 = vld [vmem:[%s551_s25 + $0x28] sm:$0xff] }
  0x13   : > { %v207_v12 = vpack.c.bf16 %v195_v10, %v194_v8  ;;  %v222_v15 = vld [vmem:[%s185_s22 + $0x18] sm:$0xff]  ;;  %v208_v16 = vpack.c.bf16 %v197_v14, %v196_v13  ;;  %v198_v17 = vld [vmem:[%s551_s25 + $0x30] sm:$0xff]  ;;  %v200_v20 = vld [vmem:[%s551_s25 + $0x40] sm:$0xff] }
  0x14   : > { %456 = vmatprep.subr.bf16.mxu0 %v206_v9  ;;  %v199_v18 = vld [vmem:[%s551_s25 + $0x38] sm:$0xff]  ;;  %v201_v21 = vld [vmem:[%s551_s25 + $0x48] sm:$0xff]  ;;  %v202_v23 = vld [vmem:[%s551_s25 + $0x50] sm:$0xff] }
  0x15   : > { %457 = vmatpush3.bf16.msra.mxu0 %v206_v9  ;;  %230 = vperm.xlu0 %485, %v220_v11   ;;  %v209_v19 = vpack.c.bf16 %v199_v18, %v198_v17  ;;  %v210_v22 = vpack.c.bf16 %v201_v21, %v200_v20  ;;  %v203_v24 = vld [vmem:[%s551_s25 + $0x58] sm:$0xff]  ;;  %v204_v26 = vld [vmem:[%s551_s25 + $0x60] sm:$0xff]  ;;  %v205_v27 = vld [vmem:[%s551_s25 + $0x68] sm:$0xf] }
  0x16   : > { %458 = vmatprep.subr.bf16.mxu0 %v207_v12  ;;  %240 = vperm.xlu1 %486, %v222_v15   ;;  %v211_v25 = vpack.c.bf16 %v203_v24, %v202_v23  ;;  %v212_v28 = vpack.c.bf16 %v205_v27, %v204_v26 }
  0x18   : > { %v252_v31 = vsel %vm250_vm1, %v212_v28, 0 }
  0x19   : > { %459 = vmatpush3.bf16.msra.mxu0 %v207_v12 }
  0x1a   : > { %460 = vmatprep.subr.bf16.mxu0 %v208_v16 }
  0x1d   : > { %461 = vmatpush3.bf16.msra.mxu0 %v208_v16 }
  0x1e   : > { %462 = vmatprep.subr.bf16.mxu0 %v209_v19 }
  0x21   : > { %463 = vmatpush3.bf16.msra.mxu0 %v209_v19 }
  0x22   : > { %464 = vmatprep.subr.bf16.mxu0 %v210_v22 }
  0x25   : > { %465 = vmatpush3.bf16.msra.mxu0 %v210_v22 }
  0x26   : > { %466 = vmatprep.subr.bf16.mxu0 %v211_v25 }
  0x29   : > { %467 = vmatpush3.bf16.msra.mxu0 %v211_v25 }
  0x2a   : > { %474 = vmatprep.subr.msk.bf16.mxu0 %vm250_vm1, %v212_v28 }
  0x2d   : > { %469 = vmatpush3.bf16.msra.mxu0 %v252_v31 }
  0x30   : > { %471 = vmatmul.mubr.msk.bf16.vlgmr.msra.gmra.mrb[0].mxu0 %vm243_vm0, %v218_v32 }
  0x90   : > { %v226_v33 = vpop.permute.xlu0 %225  ;;  %v236_v34 = vpop.permute.xlu1 %235 }
  0x94   : > { %v231_v39 = vpop.permute.xlu0 %230 }
  0x95   : > { %v241_v44 = vpop.permute.xlu1 %240 }
 0x103   : > { %v472_v35 = vpop.f32.mrb[0].mxu0 }
 0x104   : > { %v288_v36 = vpop.f32.mrb[1].mxu0  ;;  %v297_v41 = vadd.f32 %v472_v35, %v236_v34 }
 0x105   : > { %v289_v37 = vadd.f32 %v288_v36, %v226_v33  ;;  %v473_v38 = vpop.f32.mrb[2].mxu0 }
 0x106   : > { %v291_v40 = vpop.f32.mrb[3].mxu0  ;;  %v300_v46 = vadd.f32 %v473_v38, %v241_v44  ;;  %v310_v47 = vsel %vm303_vm2, %v297_v41, 0.0 }
 0x107   : > { %v292_v42 = vadd.f32 %v291_v40, %v231_v39  ;;  %v304_v43 = vsel %vm303_vm2, %v289_v37, 0.0 }
 0x108   : > { %305 = vadd.xlane.f32.xlu0 %v304_v43  ;;  %v313_v48 = vsel %vm303_vm2, %v300_v46, 0.0 }
 0x109   : > { %v307_v45 = vsel %vm303_vm2, %v292_v42, 0.0 }
 0x10a   : > { %308 = vadd.xlane.f32.xlu1 %v307_v45 }
 0x10c   : > { %311 = vadd.xlane.f32.xlu0 %v310_v47 }
 0x110   : > { %314 = vadd.xlane.f32.xlu0 %v313_v48 }
 0x195   : > { %v306_v49 = vpop.xlane.xlu0 %305 }
 0x196   : > { %v316_v50 = vmul.f32 0.015625, %v306_v49 }
 0x197   : > { %v309_v51 = vpop.xlane.xlu1 %308 }
 0x198   : > { %v320_v52 = vsub.f32 %v289_v37, %v316_v50  ;;  %v317_v53 = vmul.f32 0.015625, %v309_v51 }
 0x199   : > { %v312_v54 = vpop.xlane.xlu0 %311 }
 0x19a   : > { %v321_v55 = vsub.f32 %v292_v42, %v317_v53  ;;  %v318_v56 = vmul.f32 0.015625, %v312_v54  ;;  %v324_v57 = vmul.f32 %v320_v52, %v320_v52 }
 0x19c   : > { %v322_v58 = vsub.f32 %v297_v41, %v318_v56  ;;  %v328_v59 = vsel %vm303_vm2, %v324_v57, 0.0  ;;  %v325_v60 = vmul.f32 %v321_v55, %v321_v55 }
 0x19d   : > { %329 = vadd.xlane.f32.xlu1 %v328_v59  ;;  %v315_v61 = vpop.xlane.xlu0 %314 }
 0x19e   : > { %v319_v62 = vmul.f32 0.015625, %v315_v61  ;;  %v331_v63 = vsel %vm303_vm2, %v325_v60, 0.0  ;;  %v326_v0 = vmul.f32 %v322_v58, %v322_v58 }
 0x19f   : > { %332 = vadd.xlane.f32.xlu0 %v331_v63 }
 0x1a0   : > { %v323_v1 = vsub.f32 %v300_v46, %v319_v62  ;;  %v334_v2 = vsel %vm303_vm2, %v326_v0, 0.0 }
 0x1a1   : > { %335 = vadd.xlane.f32.xlu1 %v334_v2 }
 0x1a2   : > { %v327_v3 = vmul.f32 %v323_v1, %v323_v1 }
 0x1a4   : > { %v337_v4 = vsel %vm303_vm2, %v327_v3, 0.0 }
 0x1a5   : > { %338 = vadd.xlane.f32.xlu0 %v337_v4 }
 0x22a   : > { %v330_v5 = vpop.xlane.xlu1 %329 }
 0x22b   : > { %v340_v6 = vmul.f32 0.015625, %v330_v5 }
 0x22c   : > { %v333_v7 = vpop.xlane.xlu0 %332 }
 0x22d   : > { %v344_v8 = vadd.f32 1e-05, %v340_v6  ;;  %v341_v9 = vmul.f32 0.015625, %v333_v7 }
 0x22e   : > { %v336_v10 = vpop.xlane.xlu1 %335 }
 0x22f   : > { %487 = vrsqrt.f32 %v344_v8  ;;  %v345_v11 = vadd.f32 1e-05, %v341_v9  ;;  %v342_v12 = vmul.f32 0.015625, %v336_v10 }
 0x231   : > { %489 = vrsqrt.f32 %v345_v11  ;;  %v346_v13 = vadd.f32 1e-05, %v342_v12 }
 0x232   : > { %v339_v14 = vpop.xlane.xlu0 %338 }
 0x233   : > { %491 = vrsqrt.f32 %v346_v13  ;;  %v343_v15 = vmul.f32 0.015625, %v339_v14 }
 0x235   : > { %v347_v16 = vadd.f32 1e-05, %v343_v15 }
 0x237   : > { %493 = vrsqrt.f32 %v347_v16 }
 0x239   : > { %v488_v17 = vpop.eup %487 }
 0x23a   : > { %v352_v18 = vmul.f32 %v488_v17, %v320_v52 }
 0x23b   : > { %v490_v19 = vpop.eup %489 }
 0x23c   : > { %v356_v20 = vmax.f32 %v352_v18, 0.0  ;;  %v353_v21 = vmul.f32 %v490_v19, %v321_v55 }
 0x23d   : > { %v492_v22 = vpop.eup %491 }
 0x23e   : > { %360 = vst.msk [vmem:[%s190_s5] sm:$0xff] %vm303_vm2, %v356_v20  ;;  %v357_v23 = vmax.f32 %v353_v21, 0.0  ;;  %v354_v24 = vmul.f32 %v492_v22, %v322_v58 }
 0x240   : > { %361 = vst.msk [vmem:[%s190_s5 + $0x8] sm:$0xff] %vm303_vm2, %v357_v23  ;;  %v358_v25 = vmax.f32 %v354_v24, 0.0 }
 0x241   : > { %v494_v26 = vpop.eup %493 }
 0x242   : > { %362 = vst.msk [vmem:[%s190_s5 + $0x10] sm:$0xff] %vm303_vm2, %v358_v25  ;;  %v355_v27 = vmul.f32 %v494_v26, %v323_v1 }
 0x244   : > { %v359_v28 = vmax.f32 %v355_v27, 0.0 }
 0x246   : > { %363 = vst.msk [vmem:[%s190_s5 + $0x18] sm:$0xff] %vm303_vm2, %v359_v28 }
 0x247 PF: > { %s13_s12 = sadd.s32 1, %s501_s12  }
 0x248   : > { %p10_p4 = scmp.ge.s32.totalorder %s13_s12, 4  }
 0x24a   :  { %12 = sbr.rel (!%p10_p4) target bundleno = 1 (0x1), region = 65 }

// kernel: tile.8
= control target key start
LH: loop header
LB: loop body
LE: loop exit
PB: predicated region body
PF: predicated region fallthrough
CT: control target
= control target key end

     0   :  { %s22_s0 = inlined_call_operand.vmem [shape: f32[8], index: 0, kind: input, shape index: {}]   ;;  %s23_s1 = inlined_call_operand.vmem [shape: f32[4,8], index: 1, kind: output, shape index: {}]  }
   0x1   :  { %v4_v0 = vld [vmem:[%s22_s0] ss:$0 sm:$0xff] }
   0x2   :  { %5 = vst [vmem:[%s23_s1] sm:$0xf] %v4_v0 }

// kernel: stretch_net_forward.6
= control target key start
LH: loop header
LB: loop body
LE: loop exit
PB: predicated region body
PF: predicated region fallthrough
CT: control target
= control target key end

     0   :  { %s501_s12 = smov 0   ;;  %s602_s0 = inlined_call_operand.vmem [shape: f32[2,144,64], index: 0, kind: input, shape index: {}]   ;;  %s603_s1 = inlined_call_operand.vmem [shape: f32[32,144], index: 1, kind: input, shape index: {}]   ;;  %s604_s2 = inlined_call_operand.vmem [shape: f32[2,32,1], index: 2, kind: input, shape index: {}]   ;;  %s605_s3 = inlined_call_operand.vmem [shape: f32[2,32,64], index: 3, kind: output, shape index: {}]  }
   0x1 LB: > { %s424_s13 = sadd.s32 4294967295, %s478_s12   ;;  %p428_p0 = scmp.ge.s32.totalorder %s478_s12, 1  ;;  %s478_s12 = sphi %s501_s12, %s13_s12  }
   0x2   : > { %p147_p1 = scmp.lt.s32.totalorder %s478_s12, 3 }
   0x4   : > { %p148_p2 = pnand %p428_p0, %p147_p1 }
   0x5   : > { %p176_p3 = scmp.lt.s32.totalorder (!%p148_p2), %s424_s13, 1  ;;  %v220_v0 = vld [vmem:[%s603_s1 + $0x8] sm:$0xff] (!%p148_p2)  ;;  %v222_v1 = vld [vmem:[%s603_s1 + $0x18] sm:$0xff] (!%p148_p2)  ;;  %vm255_vm0 = vcmask (!%p148_p2), 130048   ;;  %v480_v3 = vmov (!%p148_p2), 0   ;;  %v219_v37 = vld [vmem:[%s603_s1] sm:$0xff] (!%p148_p2) }
   0x6   : > { %151 = sbr.rel (%p148_p2) target bundleno = 598 (0x256), region = 32  ;;  %v224_v2 = vld [vmem:[%s603_s1 + $0x28] sm:$0xff] (!%p148_p2)  ;;  %262 = vmatprep.subr.bf16.mxu0 (!%p148_p2), %v480_v3  ;;  %440 = vmatprep.subr.bf16.mxu1 (!%p148_p2), %v480_v3  ;;  %v228_v4 = vpack.c.bf16 (!%p148_p2), %v222_v1, %v220_v0  ;;  %v226_v5 = vld [vmem:[%s603_s1 + $0x38] sm:$0xff] (!%p148_p2)  ;;  %v221_v39 = vld [vmem:[%s603_s1 + $0x10] sm:$0xff] (!%p148_p2)  ;;  %vm314_vm1 = vcmask (!%p148_p2), 523264  }
   0x7   : > { %v230_v6 = vpack.c.bf16 (!%p148_p2), %v226_v5, %v224_v2  ;;  %468 = vset.pattern.permute.xlu0 (!%p148_p2), %v480_v3  ;;  %469 = vset.pattern.permute.xlu1 (!%p148_p2), %v480_v3  ;;  %v223_v40 = vld [vmem:[%s603_s1 + $0x20] sm:$0xff] (!%p148_p2)  ;;  %v225_v41 = vld [vmem:[%s603_s1 + $0x30] sm:$0xff] (!%p148_p2)  ;;  %v227_v42 = vpack.c.bf16 (!%p148_p2), %v221_v39, %v219_v37 }
   0x8   : > { %434 = vmatprep.mubr.msk.bf16.mxu0 (!%p148_p2), %vm255_vm0, %v228_v4  ;;  %v229_v43 = vpack.c.bf16 (!%p148_p2), %v225_v41, %v223_v40 }
   0x9   : > { %435 = vmatprep.mubr.msk.bf16.mxu1 (!%p148_p2), %vm255_vm0, %v230_v6 }
   0xd   : > { %s607_s13 = smov (!%p176_p3, %s424_s13), 1 }
   0xe   : > { %s458_s22 = smul.u32 144, %s607_s13  ;;  %s438_s23 = sshll.u32 %s607_s13, 5 }
   0xf   : > { %s185_s26 = scalar_lea.vmem %s604_s2, %s438_s23  ;;  %s190_s15 = scalar_lea.vmem %s605_s3, %s438_s23 }
  0x10   : > { %s537_s29 = scalar_lea.vmem %s602_s0, %s458_s22  ;;  %v231_v7 = vld [vmem:[%s185_s26] sm:$0xff]  ;;  %v233_v8 = vld [vmem:[%s185_s26 + $0x10] sm:$0xff]  ;;  %v232_v14 = vld [vmem:[%s185_s26 + $0x8] sm:$0xff] }
  0x11   : > { %v192_v9 = vld [vmem:[%s537_s29] sm:$0xff]  ;;  %v193_v10 = vld [vmem:[%s537_s29 + $0x8] sm:$0xff]  ;;  %v194_v11 = vld [vmem:[%s537_s29 + $0x10] sm:$0xff]  ;;  %237 = vperm.xlu0 %468, %v231_v7   ;;  %247 = vperm.xlu1 %469, %v233_v8  }
  0x12   : > { %v210_v12 = vpack.c.bf16 %v193_v10, %v192_v9  ;;  %v195_v13 = vld [vmem:[%s537_s29 + $0x18] sm:$0xff]  ;;  %v196_v16 = vld [vmem:[%s537_s29 + $0x20] sm:$0xff]  ;;  %v197_v17 = vld [vmem:[%s537_s29 + $0x28] sm:$0xff] }
  0x13   : > { %v211_v15 = vpack.c.bf16 %v195_v13, %v194_v11  ;;  %v234_v18 = vld [vmem:[%s185_s26 + $0x18] sm:$0xff]  ;;  %v212_v19 = vpack.c.bf16 %v197_v17, %v196_v16  ;;  %v198_v20 = vld [vmem:[%s537_s29 + $0x30] sm:$0xff]  ;;  %v200_v23 = vld [vmem:[%s537_s29 + $0x40] sm:$0xff] }
  0x14   : > { %263 = vmatpush1.bf16.msra.mxu0 %v210_v12  ;;  %449 = vmatpush1.bf16.msra.mxu1 %v210_v12  ;;  %v199_v21 = vld [vmem:[%s537_s29 + $0x38] sm:$0xff]  ;;  %v201_v24 = vld [vmem:[%s537_s29 + $0x48] sm:$0xff]  ;;  %v202_v26 = vld [vmem:[%s537_s29 + $0x50] sm:$0xff] }
  0x15   : > { %264 = vmatprep.subr.bf16.mxu0 %v480_v3  ;;  %441 = vmatprep.subr.bf16.mxu1 %v480_v3  ;;  %v213_v22 = vpack.c.bf16 %v199_v21, %v198_v20  ;;  %v214_v25 = vpack.c.bf16 %v201_v24, %v200_v23  ;;  %v203_v27 = vld [vmem:[%s537_s29 + $0x58] sm:$0xff]  ;;  %v204_v29 = vld [vmem:[%s537_s29 + $0x60] sm:$0xff]  ;;  %v205_v30 = vld [vmem:[%s537_s29 + $0x68] sm:$0xff] }
  0x16   : > { %242 = vperm.xlu0 %468, %v232_v14   ;;  %252 = vperm.xlu1 %469, %v234_v18   ;;  %v215_v28 = vpack.c.bf16 %v203_v27, %v202_v26  ;;  %v216_v31 = vpack.c.bf16 %v205_v30, %v204_v29  ;;  %v206_v32 = vld [vmem:[%s537_s29 + $0x70] sm:$0xff]  ;;  %v207_v33 = vld [vmem:[%s537_s29 + $0x78] sm:$0xff]  ;;  %v208_v35 = vld [vmem:[%s537_s29 + $0x80] sm:$0xff] }
  0x17   : > { %v217_v34 = vpack.c.bf16 %v207_v33, %v206_v32  ;;  %v209_v36 = vld [vmem:[%s537_s29 + $0x88] sm:$0xff] }
  0x18   : > { %265 = vmatpush1.bf16.msra.mxu0 %v211_v15  ;;  %450 = vmatpush1.bf16.msra.mxu1 %v211_v15  ;;  %v218_v38 = vpack.c.bf16 %v209_v36, %v208_v35 }
  0x19   : > { %266 = vmatprep.subr.bf16.mxu0 %v480_v3  ;;  %442 = vmatprep.subr.bf16.mxu1 %v480_v3 }
  0x1c   : > { %267 = vmatpush1.bf16.msra.mxu0 %v212_v19  ;;  %451 = vmatpush1.bf16.msra.mxu1 %v212_v19 }
  0x1d   : > { %268 = vmatprep.subr.bf16.mxu0 %v480_v3  ;;  %443 = vmatprep.subr.bf16.mxu1 %v480_v3 }
  0x20   : > { %269 = vmatpush1.bf16.msra.mxu0 %v213_v22  ;;  %452 = vmatpush1.bf16.msra.mxu1 %v213_v22 }
  0x21   : > { %270 = vmatprep.subr.bf16.mxu0 %v480_v3  ;;  %444 = vmatprep.subr.bf16.mxu1 %v480_v3 }
  0x24   : > { %271 = vmatpush1.bf16.msra.mxu0 %v214_v25  ;;  %453 = vmatpush1.bf16.msra.mxu1 %v214_v25 }
  0x25   : > { %272 = vmatprep.subr.bf16.mxu0 %v480_v3  ;;  %445 = vmatprep.subr.bf16.mxu1 %v480_v3 }
  0x28   : > { %273 = vmatpush1.bf16.msra.mxu0 %v215_v28  ;;  %454 = vmatpush1.bf16.msra.mxu1 %v215_v28 }
  0x29   : > { %274 = vmatprep.subr.bf16.mxu0 %v480_v3  ;;  %446 = vmatprep.subr.bf16.mxu1 %v480_v3 }
  0x2c   : > { %275 = vmatpush1.bf16.msra.mxu0 %v216_v31  ;;  %455 = vmatpush1.bf16.msra.mxu1 %v216_v31 }
  0x2d   : > { %276 = vmatprep.subr.bf16.mxu0 %v480_v3  ;;  %447 = vmatprep.subr.bf16.mxu1 %v480_v3 }
  0x30   : > { %277 = vmatpush1.bf16.msra.mxu0 %v217_v34  ;;  %456 = vmatpush1.bf16.msra.mxu1 %v217_v34 }
  0x31   : > { %278 = vmatprep.subr.bf16.mxu0 %v480_v3  ;;  %448 = vmatprep.subr.bf16.mxu1 %v480_v3 }
  0x34   : > { %279 = vmatpush1.bf16.msra.mxu0 %v218_v38  ;;  %457 = vmatpush1.bf16.msra.mxu1 %v218_v38 }
  0x37   : > { %295 = vmatmul.mubr.bf16.vlgmr.msra.gmra.mrb[0].mxu0 %v227_v42  ;;  %303 = vmatmul.mubr.bf16.vlgmr.msra.gmra.mrb[0].mxu1 %v229_v43 }
  0x90   : > { %v238_v44 = vpop.permute.xlu0 %237  ;;  %v248_v45 = vpop.permute.xlu1 %247 }
  0x95   : > { %v243_v46 = vpop.permute.xlu0 %242  ;;  %v253_v57 = vpop.permute.xlu1 %252 }
 0x10a   : > { %v296_v47 = vpop.f32.mrb[0].mxu0  ;;  %v304_v48 = vpop.f32.mrb[0].mxu1 }
 0x10b   : > { %v298_v49 = vpop.f32.mrb[1].mxu0  ;;  %v306_v50 = vpop.f32.mrb[1].mxu1  ;;  %v297_v53 = vadd.f32 %v296_v47, %v238_v44  ;;  %v305_v58 = vadd.f32 %v304_v48, %v248_v45 }
 0x10c   : > { %v299_v51 = vpop.f32.mrb[2].mxu0  ;;  %v307_v52 = vpop.f32.mrb[2].mxu1 }
 0x10d   : > { %v300_v54 = vadd.f32 %v299_v51, %v243_v46  ;;  %v301_v55 = vpop.f32.mrb[3].mxu0  ;;  %v309_v56 = vpop.f32.mrb[3].mxu1  ;;  %v308_v60 = vadd.f32 %v307_v52, %v253_v57 }
 0x10f   : > { %v311_v59 = vadd.f32 %v300_v54, %v297_v53 }
 0x111   : > { %v312_v61 = vadd.f32 %v311_v59, %v305_v58 }
 0x113   : > { %v313_v62 = vadd.f32 %v312_v61, %v308_v60 }
 0x115   : > { %v315_v63 = vsel %vm314_vm1, %v313_v62, 0.0 }
 0x116   : > { %316 = vadd.xlane.f32.xlu0 %v315_v63 }
 0x1a3   : > { %v317_v0 = vpop.xlane.xlu0 %316 }
 0x1a4   : > { %v318_v1 = vmul.f32 0.00390625, %v317_v0 }
 0x1a6   : > { %v320_v2 = vsub.f32 %v300_v54, %v318_v1  ;;  %v319_v3 = vsub.f32 %v297_v53, %v318_v1  ;;  %v321_v4 = vsub.f32 %v305_v58, %v318_v1  ;;  %v322_v5 = vsub.f32 %v308_v60, %v318_v1 }
 0x1a8   : > { %v327_v6 = vmul.f32 %v320_v2, %v320_v2  ;;  %v323_v7 = vmul.f32 %v319_v3, %v319_v3  ;;  %v332_v10 = vmul.f32 %v321_v4, %v321_v4  ;;  %v337_v11 = vmul.f32 %v322_v5, %v322_v5 }
 0x1aa   : > { %v328_v8 = vsel %vm314_vm1, %v327_v6, 0.0  ;;  %v324_v9 = vsel %vm314_vm1, %v323_v7, 0.0  ;;  %v333_v12 = vsel %vm314_vm1, %v332_v10, 0.0  ;;  %v338_v13 = vsel %vm314_vm1, %v337_v11, 0.0 }
 0x1ab   : > { %329 = vadd.xlane.f32.xlu0 %v328_v8  ;;  %325 = vadd.xlane.f32.xlu1 %v324_v9 }
 0x1af   : > { %334 = vadd.xlane.f32.xlu0 %v333_v12  ;;  %339 = vadd.xlane.f32.xlu1 %v338_v13 }
 0x238   : > { %v330_v14 = vpop.xlane.xlu0 %329  ;;  %v326_v15 = vpop.xlane.xlu1 %325 }
 0x239   : > { %v331_v16 = vadd.f32 %v330_v14, %v326_v15 }
 0x23c   : > { %v335_v17 = vpop.xlane.xlu0 %334  ;;  %v340_v19 = vpop.xlane.xlu1 %339 }
 0x23d   : > { %v336_v18 = vadd.f32 %v335_v17, %v331_v16 }
 0x23f   : > { %v341_v20 = vadd.f32 %v340_v19, %v336_v18 }
 0x241   : > { %v342_v21 = vmul.f32 0.00390625, %v341_v20 }
 0x243   : > { %v343_v22 = vadd.f32 1e-05, %v342_v21 }
 0x245   : > { %470 = vrsqrt.f32 %v343_v22 }
 0x24f   : > { %v471_v23 = vpop.eup %470 }
 0x250   : > { %v345_v24 = vmul.f32 %v471_v23, %v319_v3  ;;  %v347_v25 = vmul.f32 %v471_v23, %v320_v2  ;;  %v349_v26 = vmul.f32 %v471_v23, %v321_v4  ;;  %v351_v27 = vmul.f32 %v471_v23, %v322_v5 }
 0x252   : > { %v346_v28 = vmax.f32 %v345_v24, 0.0  ;;  %v348_v29 = vmax.f32 %v347_v25, 0.0  ;;  %v350_v30 = vmax.f32 %v349_v26, 0.0  ;;  %v352_v31 = vmax.f32 %v351_v27, 0.0 }
 0x254   : > { %353 = vst.msk [vmem:[%s190_s15] sm:$0xff] %vm314_vm1, %v346_v28  ;;  %354 = vst.msk [vmem:[%s190_s15 + $0x8] sm:$0xff] %vm314_vm1, %v348_v29 }
 0x255   : > { %355 = vst.msk [vmem:[%s190_s15 + $0x10] sm:$0xff] %vm314_vm1, %v350_v30  ;;  %356 = vst.msk [vmem:[%s190_s15 + $0x18] sm:$0xff] %vm314_vm1, %v352_v31 }
 0x256 PF: > { %s13_s12 = sadd.s32 1, %s478_s12  }
 0x257   : > { %p10_p4 = scmp.ge.s32.totalorder %s13_s12, 4  }
 0x259   :  { %12 = sbr.rel (!%p10_p4) target bundleno = 1 (0x1), region = 65 }

// kernel: stretch_net_forward.7
= control target key start
LH: loop header
LB: loop body
LE: loop exit
PB: predicated region body
PF: predicated region fallthrough
CT: control target
= control target key end

     0   :  { %s586_s12 = smov 0   ;;  %s729_s0 = inlined_call_operand.vmem [shape: f32[2,392,256], index: 0, kind: input, shape index: {}]   ;;  %s730_s1 = inlined_call_operand.vmem [shape: f32[3,392], index: 1, kind: input, shape index: {}]   ;;  %s731_s2 = inlined_call_operand.vmem [shape: f32[2,3,1], index: 2, kind: input, shape index: {}]   ;;  %s732_s3 = inlined_call_operand.vmem [shape: f32[2,3,256], index: 3, kind: output, shape index: {}]  }
   0x1 LB: > { %s522_s13 = sadd.s32 4294967295, %s563_s12   ;;  %p526_p0 = scmp.ge.s32.totalorder %s563_s12, 1  ;;  %s563_s12 = sphi %s586_s12, %s13_s12  }
   0x2   : > { %p146_p1 = scmp.lt.s32.totalorder %s563_s12, 3 }
   0x4   : > { %p147_p2 = pnand %p526_p0, %p146_p1 }
   0x5   : > { %p174_p3 = scmp.lt.s32.totalorder (!%p147_p2), %s522_s13, 1  ;;  %v597_v0 = vld [vmem:[%s730_s1 + $0x8] sm:$0x77] (!%p147_p2)  ;;  %v604_v2 = vld [vmem:[%s730_s1] sm:$0x77] (!%p147_p2)  ;;  %v565_v3 = vmov (!%p147_p2), 0  }
   0x6   : > { %150 = sbr.rel (%p147_p2) target bundleno = 315 (0x13b), region = 32  ;;  %v342_v1 = vcombine.high (!%p147_p2), %v597_v0, %v597_v0  ;;  %550 = vset.pattern.permute.xlu0 (!%p147_p2), %v565_v3  ;;  %vm355_vm0 = vcmask (!%p147_p2), 64512   ;;  %v341_v4 = vcombine.high (!%p147_p2), %v604_v2, %v604_v2  ;;  %vm359_vm1 = vcmask (!%p147_p2), 1043456  }
   0x8   : > { %v348_v5 = vpack.c.bf16 (!%p147_p2), %v342_v1, %v342_v1  ;;  %v346_v6 = vpack.c.bf16 (!%p147_p2), %v341_v4, %v341_v4 }
   0xa   : > { %532 = vmatprep.mubr.msk.bf16.mxu0 (!%p147_p2), %vm355_vm0, %v348_v5  ;;  %398 = vmatprep.mubr.bf16.mxu1 (!%p147_p2), %v346_v6 }
   0xd   : > { %s734_s13 = smov (!%p174_p3, %s522_s13), 1 }
   0xe   : > { %s540_s18 = smul.u32 784, %s734_s13  ;;  %s528_s19 = sshll.u32 %s734_s13, 2 }
   0xf   : > { %s182_s22 = scalar_lea.vmem %s731_s2, %s528_s19  ;;  %s535_s26 = sshll.u32 %s734_s13, 3 }
  0x10   : > { %s618_s25 = scalar_lea.vmem %s729_s0, %s540_s18  ;;  %v349_v7 = vld [vmem:[%s182_s22] sm:$0x7]  ;;  %s187_s29 = scalar_lea.vmem %s732_s3, %s535_s26 }
  0x11   : > { %v190_v8 = vld [vmem:[%s618_s25 + $0x8] sm:$0xff]  ;;  %v192_v9 = vld [vmem:[%s618_s25 + $0x18] sm:$0xff]  ;;  %v189_v10 = vld [vmem:[%s618_s25] sm:$0xff]  ;;  %352 = vperm.xlu0 %550, %v349_v7  }
  0x12   : > { %v288_v11 = vpack.c.bf16 %v192_v9, %v190_v8  ;;  %v191_v12 = vld [vmem:[%s618_s25 + $0x10] sm:$0xff]  ;;  %v194_v13 = vld [vmem:[%s618_s25 + $0x28] sm:$0xff]  ;;  %v196_v14 = vld [vmem:[%s618_s25 + $0x38] sm:$0xff] }
  0x13   : > { %v287_v15 = vpack.c.bf16 %v191_v12, %v189_v10  ;;  %v290_v16 = vpack.c.bf16 %v196_v14, %v194_v13  ;;  %v193_v17 = vld [vmem:[%s618_s25 + $0x20] sm:$0xff]  ;;  %v195_v18 = vld [vmem:[%s618_s25 + $0x30] sm:$0xff]  ;;  %v198_v19 = vld [vmem:[%s618_s25 + $0x48] sm:$0xff] }
  0x14   : > { %366 = vmatprep.subr.bf16.mxu1 %v288_v11  ;;  %v200_v20 = vld [vmem:[%s618_s25 + $0x58] sm:$0xff]  ;;  %v289_v21 = vpack.c.bf16 %v195_v18, %v193_v17  ;;  %v197_v23 = vld [vmem:[%s618_s25 + $0x40] sm:$0xff]  ;;  %v199_v24 = vld [vmem:[%s618_s25 + $0x50] sm:$0xff] }
  0x15   : > { %367 = vmatpush1.bf16.msra.mxu1 %v287_v15  ;;  %v292_v22 = vpack.c.bf16 %v200_v20, %v198_v19  ;;  %v202_v25 = vld [vmem:[%s618_s25 + $0x68] sm:$0xff]  ;;  %v204_v26 = vld [vmem:[%s618_s25 + $0x78] sm:$0xff]  ;;  %v291_v27 = vpack.c.bf16 %v199_v24, %v197_v23  ;;  %v201_v28 = vld [vmem:[%s618_s25 + $0x60] sm:$0xff] }
  0x16   : > { %368 = vmatprep.subr.bf16.mxu1 %v290_v16  ;;  %v294_v29 = vpack.c.bf16 %v204_v26, %v202_v25  ;;  %v203_v30 = vld [vmem:[%s618_s25 + $0x70] sm:$0xff]  ;;  %v254_v31 = vld [vmem:[%s618_s25 + $0x208] sm:$0xff]  ;;  %v256_v32 = vld [vmem:[%s618_s25 + $0x218] sm:$0xff] }
  0x17   : > { %v206_v33 = vld [vmem:[%s618_s25 + $0x88] sm:$0xff]  ;;  %v208_v34 = vld [vmem:[%s618_s25 + $0x98] sm:$0xff]  ;;  %v320_v35 = vpack.c.bf16 %v256_v32, %v254_v31  ;;  %v253_v36 = vld [vmem:[%s618_s25 + $0x200] sm:$0xff]  ;;  %v293_v38 = vpack.c.bf16 %v203_v30, %v201_v28 }
  0x18   : > { %v255_v37 = vld [vmem:[%s618_s25 + $0x210] sm:$0xff]  ;;  %v205_v39 = vld [vmem:[%s618_s25 + $0x80] sm:$0xff]  ;;  %v258_v41 = vld [vmem:[%s618_s25 + $0x228] sm:$0xff]  ;;  %v296_v43 = vpack.c.bf16 %v208_v34, %v206_v33 }
  0x19   : > { %369 = vmatpush1.bf16.msra.mxu1 %v289_v21  ;;  %407 = vmatprep.subr.bf16.mxu0 %v320_v35  ;;  %v319_v40 = vpack.c.bf16 %v255_v37, %v253_v36  ;;  %v260_v42 = vld [vmem:[%s618_s25 + $0x238] sm:$0xff]  ;;  %v207_v44 = vld [vmem:[%s618_s25 + $0x90] sm:$0xff]  ;;  %v257_v46 = vld [vmem:[%s618_s25 + $0x220] sm:$0xff] }
  0x1a   : > { %370 = vmatprep.subr.bf16.mxu1 %v292_v22  ;;  %v322_v45 = vpack.c.bf16 %v260_v42, %v258_v41  ;;  %v259_v47 = vld [vmem:[%s618_s25 + $0x230] sm:$0xff]  ;;  %v210_v48 = vld [vmem:[%s618_s25 + $0xa8] sm:$0xff]  ;;  %v212_v49 = vld [vmem:[%s618_s25 + $0xb8] sm:$0xff]  ;;  %v295_v53 = vpack.c.bf16 %v207_v44, %v205_v39 }
  0x1b   : > { %408 = vmatpush1.bf16.msra.mxu0 %v319_v40  ;;  %v321_v50 = vpack.c.bf16 %v259_v47, %v257_v46  ;;  %v262_v51 = vld [vmem:[%s618_s25 + $0x248] sm:$0xff]  ;;  %v264_v52 = vld [vmem:[%s618_s25 + $0x258] sm:$0xff]  ;;  %v209_v54 = vld [vmem:[%s618_s25 + $0xa0] sm:$0xff]  ;;  %v298_v58 = vpack.c.bf16 %v212_v49, %v210_v48 }
  0x1c   : > { %409 = vmatprep.subr.bf16.mxu0 %v322_v45  ;;  %v324_v55 = vpack.c.bf16 %v264_v52, %v262_v51  ;;  %v261_v56 = vld [vmem:[%s618_s25 + $0x240] sm:$0xff]  ;;  %v263_v57 = vld [vmem:[%s618_s25 + $0x250] sm:$0xff]  ;;  %v266_v60 = vld [vmem:[%s618_s25 + $0x268] sm:$0xff] }
  0x1d   : > { %371 = vmatpush1.bf16.msra.mxu1 %v291_v27  ;;  %v211_v59 = vld [vmem:[%s618_s25 + $0xb0] sm:$0xff]  ;;  %v268_v61 = vld [vmem:[%s618_s25 + $0x278] sm:$0xff]  ;;  %v214_v62 = vld [vmem:[%s618_s25 + $0xc8] sm:$0xff]  ;;  %v323_v1 = vpack.c.bf16 %v263_v57, %v261_v56 }
  0x1e   : > { %372 = vmatprep.subr.bf16.mxu1 %v294_v29  ;;  %v216_v63 = vld [vmem:[%s618_s25 + $0xd8] sm:$0xff]  ;;  %v326_v3 = vpack.c.bf16 %v268_v61, %v266_v60  ;;  %v265_v4 = vld [vmem:[%s618_s25 + $0x260] sm:$0xff]  ;;  %v267_v5 = vld [vmem:[%s618_s25 + $0x270] sm:$0xff]  ;;  %v297_v6 = vpack.c.bf16 %v211_v59, %v209_v54 }
  0x1f   : > { %410 = vmatpush1.bf16.msra.mxu0 %v321_v50  ;;  %v270_v7 = vld [vmem:[%s618_s25 + $0x288] sm:$0xff]  ;;  %v272_v8 = vld [vmem:[%s618_s25 + $0x298] sm:$0xff]  ;;  %v300_v9 = vpack.c.bf16 %v216_v63, %v214_v62  ;;  %v213_v10 = vld [vmem:[%s618_s25 + $0xc0] sm:$0xff]  ;;  %v325_v14 = vpack.c.bf16 %v267_v5, %v265_v4 }
  0x20   : > { %411 = vmatprep.subr.bf16.mxu0 %v324_v55  ;;  %v215_v11 = vld [vmem:[%s618_s25 + $0xd0] sm:$0xff]  ;;  %v218_v12 = vld [vmem:[%s618_s25 + $0xe8] sm:$0xff]  ;;  %v220_v13 = vld [vmem:[%s618_s25 + $0xf8] sm:$0xff]  ;;  %v328_v15 = vpack.c.bf16 %v272_v8, %v270_v7 }
  0x21   : > { %373 = vmatpush1.bf16.msra.mxu1 %v293_v38  ;;  %v269_v16 = vld [vmem:[%s618_s25 + $0x280] sm:$0xff]  ;;  %v271_v17 = vld [vmem:[%s618_s25 + $0x290] sm:$0xff]  ;;  %v299_v18 = vpack.c.bf16 %v215_v11, %v213_v10  ;;  %v274_v19 = vld [vmem:[%s618_s25 + $0x2a8] sm:$0xff]  ;;  %v302_v21 = vpack.c.bf16 %v220_v13, %v218_v12 }
  0x22   : > { %374 = vmatprep.subr.bf16.mxu1 %v296_v43  ;;  %v276_v20 = vld [vmem:[%s618_s25 + $0x2b8] sm:$0xff]  ;;  %v217_v22 = vld [vmem:[%s618_s25 + $0xe0] sm:$0xff]  ;;  %v219_v23 = vld [vmem:[%s618_s25 + $0xf0] sm:$0xff]  ;;  %v327_v26 = vpack.c.bf16 %v271_v17, %v269_v16 }
  0x23   : > { %412 = vmatpush1.bf16.msra.mxu0 %v323_v1  ;;  %v222_v24 = vld [vmem:[%s618_s25 + $0x108] sm:$0xff]  ;;  %v224_v25 = vld [vmem:[%s618_s25 + $0x118] sm:$0xff]  ;;  %v330_v27 = vpack.c.bf16 %v276_v20, %v274_v19  ;;  %v273_v28 = vld [vmem:[%s618_s25 + $0x2a0] sm:$0xff]  ;;  %v301_v30 = vpack.c.bf16 %v219_v23, %v217_v22 }
  0x24   : > { %413 = vmatprep.subr.bf16.mxu0 %v326_v3  ;;  %v275_v29 = vld [vmem:[%s618_s25 + $0x2b0] sm:$0xff]  ;;  %v278_v31 = vld [vmem:[%s618_s25 + $0x2c8] sm:$0xff]  ;;  %v280_v32 = vld [vmem:[%s618_s25 + $0x2d8] sm:$0xff]  ;;  %v304_v33 = vpack.c.bf16 %v224_v25, %v222_v24 }
  0x25   : > { %375 = vmatpush1.bf16.msra.mxu1 %v295_v53  ;;  %v221_v34 = vld [vmem:[%s618_s25 + $0x100] sm:$0xff]  ;;  %v223_v35 = vld [vmem:[%s618_s25 + $0x110] sm:$0xff]  ;;  %v226_v36 = vld [vmem:[%s618_s25 + $0x128] sm:$0xff]  ;;  %v329_v38 = vpack.c.bf16 %v275_v29, %v273_v28  ;;  %v332_v39 = vpack.c.bf16 %v280_v32, %v278_v31 }
  0x26   : > { %376 = vmatprep.subr.bf16.mxu1 %v298_v58  ;;  %v228_v37 = vld [vmem:[%s618_s25 + $0x138] sm:$0xff]  ;;  %v277_v40 = vld [vmem:[%s618_s25 + $0x2c0] sm:$0xff]  ;;  %v279_v41 = vld [vmem:[%s618_s25 + $0x2d0] sm:$0xff]  ;;  %v303_v42 = vpack.c.bf16 %v223_v35, %v221_v34 }
  0x27   : > { %414 = vmatpush1.bf16.msra.mxu0 %v325_v14  ;;  %v282_v43 = vld [vmem:[%s618_s25 + $0x2e8] sm:$0xff]  ;;  %v284_v44 = vld [vmem:[%s618_s25 + $0x2f8] sm:$0xff]  ;;  %v306_v45 = vpack.c.bf16 %v228_v37, %v226_v36  ;;  %v225_v46 = vld [vmem:[%s618_s25 + $0x120] sm:$0xff]  ;;  %v331_v50 = vpack.c.bf16 %v279_v41, %v277_v40  ;;  %v347_v14 = vpack.c.bf16 %v597_v0, %v597_v0 }
  0x28   : > { %415 = vmatprep.subr.bf16.mxu0 %v328_v15  ;;  %v227_v47 = vld [vmem:[%s618_s25 + $0x130] sm:$0xff]  ;;  %v230_v48 = vld [vmem:[%s618_s25 + $0x148] sm:$0xff]  ;;  %v232_v49 = vld [vmem:[%s618_s25 + $0x158] sm:$0xff]  ;;  %v334_v51 = vpack.c.bf16 %v284_v44, %v282_v43 }
  0x29   : > { %377 = vmatpush1.bf16.msra.mxu1 %v297_v6  ;;  %v281_v52 = vld [vmem:[%s618_s25 + $0x2e0] sm:$0xff]  ;;  %v283_v53 = vld [vmem:[%s618_s25 + $0x2f0] sm:$0xff]  ;;  %v305_v54 = vpack.c.bf16 %v227_v47, %v225_v46  ;;  %v286_v55 = vld [vmem:[%s618_s25 + $0x308] sm:$0xff]  ;;  %v308_v57 = vpack.c.bf16 %v232_v49, %v230_v48 }
  0x2a   : > { %378 = vmatprep.subr.bf16.mxu1 %v300_v9  ;;  %v285_v56 = vld [vmem:[%s618_s25 + $0x300] sm:$0xff]  ;;  %v231_v59 = vld [vmem:[%s618_s25 + $0x150] sm:$0xff]  ;;  %v234_v60 = vld [vmem:[%s618_s25 + $0x168] sm:$0xff]  ;;  %v333_v62 = vpack.c.bf16 %v283_v53, %v281_v52  ;;  %v336_v63 = vpack.c.bf16 %v286_v55, %v286_v55 }
  0x2b   : > { %416 = vmatpush1.bf16.msra.mxu0 %v327_v26  ;;  %v229_v58 = vld [vmem:[%s618_s25 + $0x140] sm:$0xff]  ;;  %v236_v61 = vld [vmem:[%s618_s25 + $0x178] sm:$0xff]  ;;  %v335_v1 = vpack.c.bf16 %v285_v56, %v285_v56  ;;  %v235_v6 = vld [vmem:[%s618_s25 + $0x170] sm:$0xff] }
  0x2c   : > { %417 = vmatprep.subr.bf16.mxu0 %v330_v27  ;;  %v307_v3 = vpack.c.bf16 %v231_v59, %v229_v58  ;;  %v310_v4 = vpack.c.bf16 %v236_v61, %v234_v60  ;;  %v233_v5 = vld [vmem:[%s618_s25 + $0x160] sm:$0xff]  ;;  %v238_v7 = vld [vmem:[%s618_s25 + $0x188] sm:$0xff]  ;;  %v240_v8 = vld [vmem:[%s618_s25 + $0x198] sm:$0xff] }
  0x2d   : > { %379 = vmatpush1.bf16.msra.mxu1 %v299_v18  ;;  %v361_v9 = vsel %vm359_vm1, %v335_v1, 0  ;;  %v309_v10 = vpack.c.bf16 %v235_v6, %v233_v5  ;;  %v312_v11 = vpack.c.bf16 %v240_v8, %v238_v7  ;;  %v237_v12 = vld [vmem:[%s618_s25 + $0x180] sm:$0xff]  ;;  %v239_v13 = vld [vmem:[%s618_s25 + $0x190] sm:$0xff]  ;;  %v242_v15 = vld [vmem:[%s618_s25 + $0x1a8] sm:$0xff] }
  0x2e   : > { %380 = vmatprep.subr.bf16.mxu1 %v302_v21  ;;  %v244_v16 = vld [vmem:[%s618_s25 + $0x1b8] sm:$0xff]  ;;  %v311_v17 = vpack.c.bf16 %v239_v13, %v237_v12  ;;  %v241_v19 = vld [vmem:[%s618_s25 + $0x1a0] sm:$0xff]  ;;  %v243_v20 = vld [vmem:[%s618_s25 + $0x1b0] sm:$0xff] }
  0x2f   : > { %418 = vmatpush1.bf16.msra.mxu0 %v329_v38  ;;  %v314_v18 = vpack.c.bf16 %v244_v16, %v242_v15  ;;  %v246_v21 = vld [vmem:[%s618_s25 + $0x1c8] sm:$0xff]  ;;  %v248_v22 = vld [vmem:[%s618_s25 + $0x1d8] sm:$0xff]  ;;  %v313_v0 = vpack.c.bf16 %v243_v20, %v241_v19  ;;  %v245_v24 = vld [vmem:[%s618_s25 + $0x1c0] sm:$0xff] }
  0x30   : > { %419 = vmatprep.subr.bf16.mxu0 %v332_v39  ;;  %v316_v23 = vpack.c.bf16 %v248_v22, %v246_v21  ;;  %v247_v25 = vld [vmem:[%s618_s25 + $0x1d0] sm:$0xff]  ;;  %v250_v26 = vld [vmem:[%s618_s25 + $0x1e8] sm:$0xff]  ;;  %v252_v27 = vld [vmem:[%s618_s25 + $0x1f8] sm:$0xff] }
  0x31   : > { %381 = vmatpush1.bf16.msra.mxu1 %v301_v30  ;;  %v315_v28 = vpack.c.bf16 %v247_v25, %v245_v24  ;;  %v318_v29 = vpack.c.bf16 %v252_v27, %v250_v26  ;;  %v249_v30 = vld [vmem:[%s618_s25 + $0x1e0] sm:$0xff]  ;;  %v251_v31 = vld [vmem:[%s618_s25 + $0x1f0] sm:$0xff] }
  0x32   : > { %382 = vmatprep.subr.bf16.mxu1 %v304_v33  ;;  %v317_v32 = vpack.c.bf16 %v251_v31, %v249_v30  ;;  %v345_v33 = vpack.c.bf16 %v604_v2, %v604_v2 }
  0x33   : > { %420 = vmatpush1.bf16.msra.mxu0 %v331_v50 }
  0x34   : > { %421 = vmatprep.subr.bf16.mxu0 %v334_v51 }
  0x35   : > { %383 = vmatpush1.bf16.msra.mxu1 %v303_v42 }
  0x36   : > { %384 = vmatprep.subr.bf16.mxu1 %v306_v45 }
  0x37   : > { %422 = vmatpush1.bf16.msra.mxu0 %v333_v62 }
  0x38   : > { %531 = vmatprep.subr.msk.bf16.mxu0 %vm359_vm1, %v336_v63 }
  0x39   : > { %385 = vmatpush1.bf16.msra.mxu1 %v305_v54 }
  0x3a   : > { %386 = vmatprep.subr.bf16.mxu1 %v308_v57 }
  0x3b   : > { %424 = vmatpush1.bf16.msra.mxu0 %v361_v9 }
  0x3d   : > { %387 = vmatpush1.bf16.msra.mxu1 %v307_v3 }
  0x3e   : > { %388 = vmatprep.subr.bf16.mxu1 %v310_v4  ;;  %440 = vmatmul.mubr.bf16.vlgmr.msra.gmra.mrb[0].mxu0 %v347_v14 }
  0x41   : > { %389 = vmatpush1.bf16.msra.mxu1 %v309_v10 }
  0x42   : > { %390 = vmatprep.subr.bf16.mxu1 %v312_v11 }
  0x45   : > { %391 = vmatpush1.bf16.msra.mxu1 %v311_v17 }
  0x46   : > { %392 = vmatprep.subr.bf16.mxu1 %v314_v18 }
  0x49   : > { %393 = vmatpush1.bf16.msra.mxu1 %v313_v0 }
  0x4a   : > { %394 = vmatprep.subr.bf16.mxu1 %v316_v23 }
  0x4d   : > { %395 = vmatpush1.bf16.msra.mxu1 %v315_v28 }
  0x4e   : > { %396 = vmatprep.subr.bf16.mxu1 %v318_v29 }
  0x51   : > { %397 = vmatpush1.bf16.msra.mxu1 %v317_v32 }
  0x54   : > { %399 = vmatmul.mubr.bf16.vlgmr.msra.gmra.mrb[0].mxu1 %v345_v33 }
  0x90   : > { %v353_v38 = vpop.permute.xlu0 %352 }
 0x111   : > { %v441_v34 = vpop.f32.mrb[0].mxu0 }
 0x112   : > { %v443_v35 = vpop.f32.mrb[1].mxu0 }
 0x113   : > { %v445_v36 = vpop.f32.mrb[2].mxu0 }
 0x114   : > { %v446_v37 = vpop.f32.mrb[3].mxu0 }
 0x127   : > { %v400_v39 = vpop.f32.mrb[0].mxu1 }
 0x128   : > { %v401_v40 = vadd.f32 %v400_v39, %v353_v38  ;;  %v402_v41 = vpop.f32.mrb[1].mxu1 }
 0x129   : > { %v403_v42 = vadd.f32 %v402_v41, %v353_v38  ;;  %v404_v43 = vpop.f32.mrb[2].mxu1 }
 0x12a   : > { %v442_v44 = vadd.f32 %v441_v34, %v401_v40  ;;  %v405_v45 = vpop.f32.mrb[3].mxu1 }
 0x12b   : > { %v444_v46 = vadd.f32 %v443_v35, %v403_v42 }
 0x12c   : > { %553 = vtanh.f32 %v442_v44 }
 0x12d   : > { %555 = vtanh.f32 %v444_v46 }
 0x136   : > { %v554_v2 = vpop.eup %553 }
 0x137   : > { %v556_v47 = vpop.eup %555 }
 0x138   : > { %v452_v48 = vcombine.low %v554_v2, %v556_v47 }
 0x13a   : > { %454 = vst [vmem:[%s187_s29] sm:$0x77] %v452_v48 }
 0x13b PF: > { %s13_s12 = sadd.s32 1, %s563_s12  }
 0x13c   : > { %p10_p4 = scmp.ge.s32.totalorder %s13_s12, 4  }
 0x13e   :  { %12 = sbr.rel (!%p10_p4) target bundleno = 1 (0x1), region = 65 }

</bundles_post_ra>
